<compile_context>
chip_gen: v5e
topology: v5e:2x2
jax: 0.10.0
libtpu: 0.0.40
codegen_flags: <defaults>
</compile_context>

<pallas_src>
import functools

import jax
import jax.numpy as jnp
import numpy as np
from jax.experimental import pallas as pl
from jax.experimental.pallas import tpu as pltpu


# Channels-first (cout, cin) shapes of the small f32 conv weights packed into one
# array, and bias channel counts packed into another.  Row offsets are rounded up
# to multiples of 8 so every in-kernel slice is sublane aligned.
_SMALL_W = (('ws1', 8, 8), ('ws2', 16, 8), ('ws3', 32, 16),
            ('wa1s', 32, 32), ('wa1f', 32, 32), ('wa2', 1, 32))
_BIASES = (('bf1', 64), ('bf2', 32), ('bs1', 8), ('bs2', 16),
           ('bs3', 32), ('ba1', 32), ('ba2', 1))


def _round8(x):
    return -(-x // 8) * 8


def _w_layout():
    offs, row = {}, 0
    for name, cout, cin in _SMALL_W:
        offs[name] = (row, cout, cin)
        row += _round8(cout)
    cols = max(cin for _, _, cin in _SMALL_W)
    return offs, _round8(row), cols


def _b_layout():
    offs, row = {}, 0
    for name, c in _BIASES:
        offs[name] = (row, c)
        row += _round8(c)
    return offs, _round8(row)


def _group_select_matrix(n_pix, num_anchors):
    """gsel[j, a*N + l] = 1 iff pixel j is anchor `a` of pixel l's proposal group."""
    j = np.arange(n_pix)[:, None]
    col = np.arange(num_anchors * n_pix)[None, :]
    a = col // n_pix
    l = col % n_pix
    m = ((l // num_anchors) == (j // num_anchors)) & ((j % num_anchors) == a)
    return jnp.asarray(m.astype(np.float32))


def _pack_params(params, w_offs, w_rows, w_cols, b_offs, b_rows):
    wpack = np.zeros((w_rows, w_cols), np.float32)
    for name, (row, cout, cin) in w_offs.items():
        wpack[row:row + cout, :cin] = np.asarray(params[name], np.float32).T
    bpack = np.zeros((b_rows, 1), np.float32)
    for name, (row, c) in b_offs.items():
        bpack[row:row + c, 0] = np.asarray(params[name], np.float32).reshape(-1)
    return dict(
        wf1T=jnp.asarray(np.asarray(params['wf1'], np.float32).T, jnp.bfloat16),
        wf2T=jnp.asarray(np.asarray(params['wf2'], np.float32).T, jnp.bfloat16),
        wpack=jnp.asarray(wpack),
        bpack=jnp.asarray(bpack),
    )


def _dis_weight_kernel(feat_ref, loc_ref, wf1_ref, wf2_ref, wpk_ref, bpk_ref,
                       gsel_ref, sm_ref, nrm_ref, *, w_offs, b_offs, num_anchors):
    f32 = jnp.float32
    bf16 = jnp.bfloat16

    def w(name):
        row, cout, cin = w_offs[name]
        return wpk_ref[row:row + cout, 0:cin]          # (cout, cin), sublane-aligned

    def b(name):
        row, c = b_offs[name]
        return bpk_ref[row:row + c, :]                 # (c, 1), broadcasts over lanes

    # ---- feature displacement branch: [Drop, Conv1d+BN1d+Tanh, Drop, Conv1d] ----
    xf = feat_ref[0].astype(bf16)                                            # (fd, N)
    h = jnp.tanh(jnp.dot(wf1_ref[...], xf, preferred_element_type=f32) + b('bf1'))
    feat_dis = (jnp.dot(wf2_ref[...], h.astype(bf16), preferred_element_type=f32)
                + b('bf2'))                                                  # (32, N)

    # ---- spatial displacement branch: [Conv+BN+Tanh, Conv+BN+Tanh, Conv1d] ----
    xs = loc_ref[0]                                                          # (8, N)
    h = jnp.tanh(jnp.dot(w('ws1'), xs, preferred_element_type=f32) + b('bs1'))
    h = jnp.tanh(jnp.dot(w('ws2'), h, preferred_element_type=f32) + b('bs2'))
    spat_dis = jnp.dot(w('ws3'), h, preferred_element_type=f32) + b('bs3')   # (32, N)

    # ---- aggregated MLP on concat([spatial, feature]); concat+matmul == split-weight sum ----
    h = jnp.tanh(jnp.dot(w('wa1s'), spat_dis, preferred_element_type=f32)
                 + jnp.dot(w('wa1f'), feat_dis, preferred_element_type=f32)
                 + b('ba1'))
    logits = jnp.dot(w('wa2'), h, preferred_element_type=f32) + b('ba2')     # (1, N)

    # ---- tail: tanh -> softmax over anchors -> min/max normalize, all lane-resident ----
    t = jnp.tanh(logits)
    e = jnp.exp(t)                     # |t| <= 1, so no max-subtraction is needed
    n_pix = e.shape[-1]
    # One (1,N)@(N,na*N) matmul yields, for every pixel, the exp() value of each anchor
    # of its own proposal group, already broadcast along the lane axis.
    grouped = jnp.dot(e, gsel_ref[...], preferred_element_type=f32)          # (1, na*N)
    parts = [grouped[:, a * n_pix:(a + 1) * n_pix] for a in range(num_anchors)]
    denom, mx, mn = parts[0], parts[0], parts[0]
    for a in range(1, num_anchors):
        denom = denom + parts[a]
        mx = jnp.maximum(mx, parts[a])
        mn = jnp.minimum(mn, parts[a])

    inv_d = pl.reciprocal(denom)       # exact reciprocal (approx=False)
    sm = e * inv_d                     # softmax over the anchor group
    mn_s = mn * inv_d                  # == min over the group of sm
    mx_s = mx * inv_d                  # == max over the group of sm
    k = (1.0 + 1e-6) / (mx_s - mn_s + 1e-6)
    nrm = k * (sm - mn_s)

    # Lane-dense (full 128-lane) stores.
    sm_ref[...] = sm[None]
    nrm_ref[...] = nrm[None]


def displacement_weight_forward(locations, features, params):
    """locations: (bz, num_proposals, num_anchors, 3)
       features : (bz, fd, num_proposals, num_anchors)
       returns  : (softmax_weights, normalized_weights), each (bz, 1, num, num_anchors)."""
    bz, num, na, _ = locations.shape
    fd = features.shape[1]
    n_pix = num * na

    w_offs, w_rows, w_cols = _w_layout()
    b_offs, b_rows = _b_layout()
    kp = _pack_params(params, w_offs, w_rows, w_cols, b_offs, b_rows)
    gsel = _group_select_matrix(n_pix, na)

    # Glue (cheap / copy-free): merge the proposal & anchor dims; features stay in
    # their native channels-first layout -- no HBM transpose round-trip.
    x_feat = features.reshape(bz, fd, n_pix).astype(jnp.float32)
    x_loc = jnp.transpose(locations.reshape(bz, n_pix, 3), (0, 2, 1)).astype(jnp.float32)
    x_loc = jnp.pad(x_loc, ((0, 0), (0, 5), (0, 0)))             # 3 -> 8 channels (zeros)

    # Advisory cost estimate.
    macs = sum(int(params[k].shape[0]) * int(params[k].shape[1])
               for k in ('wf1', 'wf2', 'ws1', 'ws2', 'ws3', 'wa1s', 'wa1f', 'wa2'))
    flops = 2 * bz * n_pix * macs + 2 * bz * n_pix * na * n_pix
    transc = bz * n_pix * (int(params['wf1'].shape[1]) + 8 + 16 + 32 + 2)
    bytes_accessed = (int(x_feat.size) * 4 + int(x_loc.size) * 4
                      + int(kp['wf1T'].size) * 2 + int(kp['wf2T'].size) * 2
                      + int(kp['wpack'].size) * 4 + int(kp['bpack'].size) * 4
                      + int(gsel.size) * 4 + 2 * bz * n_pix * 4)

    def const_spec(arr):  # constant index_map => DMA'd once, never re-fetched
        return pl.BlockSpec(arr.shape, lambda b: (0, 0))

    in_specs = [
        pl.BlockSpec((1, fd, n_pix), lambda b: (b, 0, 0)),
        pl.BlockSpec((1, 8, n_pix), lambda b: (b, 0, 0)),
        const_spec(kp['wf1T']), const_spec(kp['wf2T']),
        const_spec(kp['wpack']), const_spec(kp['bpack']),
        const_spec(gsel),
    ]
    out_specs = [pl.BlockSpec((1, 1, n_pix), lambda b: (b, 0, 0)),
                 pl.BlockSpec((1, 1, n_pix), lambda b: (b, 0, 0))]
    out_shape = (jax.ShapeDtypeStruct((bz, 1, n_pix), jnp.float32),
                 jax.ShapeDtypeStruct((bz, 1, n_pix), jnp.float32))

    kernel = functools.partial(_dis_weight_kernel, w_offs=w_offs, b_offs=b_offs,
                               num_anchors=na)

    # NOTE: VMEM per step is well under 2 MiB here; when scaling n_pix up (real
    # workloads) budget against v7x's 64 MiB and set vmem_limit_bytes if needed.
    sm, nrm = pl.pallas_call(
        kernel,
        out_shape=out_shape,
        grid_spec=pltpu.PrefetchScalarGridSpec(
            num_scalar_prefetch=0,
            grid=(bz,),                      # 2 parallel steps -> both v7x TensorCores
            in_specs=in_specs,
            out_specs=out_specs,
        ),
        compiler_params=pltpu.CompilerParams(dimension_semantics=("parallel",)),
        cost_estimate=pl.CostEstimate(flops=int(flops), transcendentals=int(transc),
                                      bytes_accessed=int(bytes_accessed)),
    )(x_feat, x_loc, kp['wf1T'], kp['wf2T'], kp['wpack'], kp['bpack'], gsel)

    return sm.reshape(bz, 1, num, na), nrm.reshape(bz, 1, num, na)


def init_params(key, in_channels=128):
    """Deterministic synthetic parameters matching the module's __init__ shapes,
    with BatchNorm1d (eval) folded into the preceding Conv1d."""

    def dense(k, cin, cout, scale=0.1):
        k1, k2 = jax.random.split(k)
        W = scale * jax.random.normal(k1, (cin, cout), jnp.float32)
        b = scale * jax.random.normal(k2, (1, cout), jnp.float32)
        return W, b

    def bn_stats(k, c):
        k1, k2, k3, k4 = jax.random.split(k, 4)
        gamma = 1.0 + 0.1 * jax.random.normal(k1, (c,), jnp.float32)
        beta = 0.1 * jax.random.normal(k2, (c,), jnp.float32)
        mean = 0.1 * jax.random.normal(k3, (c,), jnp.float32)
        var = 0.5 + jax.random.uniform(k4, (c,), jnp.float32)
        return gamma, beta, mean, var

    def fold(W, b, gamma, beta, mean, var, eps=1e-5):
        scale = gamma / jnp.sqrt(var + eps)
        return W * scale[None, :], b * scale[None, :] + (beta - mean * scale)[None, :]

    keys = jax.random.split(key, 16)
    c1 = in_channels // 2      # 64
    c2 = in_channels // 4      # 32 (feature branch output channels)
    p = {}

    # feature_dis_mlps: Dropout, Conv1d(128->64)+BN1d+Tanh, Dropout, Conv1d(64->32)
    W, b = dense(keys[0], in_channels, c1)
    p['wf1'], p['bf1'] = fold(W, b, *bn_stats(keys[1], c1))
    p['wf2'], p['bf2'] = dense(keys[2], c1, c2)

    # spatial_dis_mlps: Conv1d(3->8)+BN+Tanh, Conv1d(8->16)+BN+Tanh, Conv1d(16->32)
    W, b = dense(keys[3], 3, 8)
    W = jnp.pad(W, ((0, 5), (0, 0)))                 # zero-pad input channels 3 -> 8
    p['ws1'], p['bs1'] = fold(W, b, *bn_stats(keys[4], 8))
    W, b = dense(keys[5], 8, 16)
    p['ws2'], p['bs2'] = fold(W, b, *bn_stats(keys[6], 16))
    p['ws3'], p['bs3'] = dense(keys[7], 16, 32)

    # agg_mlp: Dropout(0.5), Conv1d(32+32 -> 32)+BN+Tanh, Dropout(0.1), Conv1d(32->1)
    W, b = dense(keys[8], 32 + c2, 32)
    Wf, bf = fold(W, b, *bn_stats(keys[9], 32))
    p['wa1s'], p['wa1f'] = Wf[:32], Wf[32:32 + c2]   # concat order: [spatial, feature]
    p['ba1'] = bf
    p['wa2'], p['ba2'] = dense(keys[10], 32, 1)
    return p


def ref_forward(locations, features, p):
    """Pure-JAX f32 reference (same math as the PyTorch eval-mode forward)."""
    bz, num, na, _ = locations.shape
    fd = features.shape[1]
    xf = jnp.transpose(features, (0, 2, 3, 1)).reshape(-1, fd)
    xs = jnp.pad(locations.reshape(-1, 3), ((0, 0), (0, 5)))

    h = jnp.tanh(xf @ p['wf1'] + p['bf1'])
    fdis = h @ p['wf2'] + p['bf2']
    h = jnp.tanh(xs @ p['ws1'] + p['bs1'])
    h = jnp.tanh(h @ p['ws2'] + p['bs2'])
    sdis = h @ p['ws3'] + p['bs3']
    h = jnp.tanh(sdis @ p['wa1s'] + fdis @ p['wa1f'] + p['ba1'])
    logits = (h @ p['wa2'] + p['ba2']).reshape(bz, num, na)

    t = jnp.tanh(logits)
    sm = jax.nn.softmax(t, axis=-1)
    mn = sm.min(axis=-1, keepdims=True)
    mx = sm.max(axis=-1, keepdims=True)
    k = (1.0 + 1e-6) / (mx - mn + 1e-6)
    nrm = k * (sm - mn)
    return sm[:, None], nrm[:, None]


if __name__ == "__main__":
    key = jax.random.PRNGKey(0)
    kpar, kl, kf = jax.random.split(key, 3)

    bz, num, na, fd = 2, 16, 8, 128
    locations = jax.random.normal(kl, (bz, num, na, 3), jnp.float32)
    features = jax.random.normal(kf, (bz, fd, num, na), jnp.float32)
    params = init_params(kpar, in_channels=fd)

    sm, nrm = displacement_weight_forward(locations, features, params)
    sm = jax.block_until_ready(sm)
    nrm = jax.block_until_ready(nrm)

    assert sm.shape == (bz, 1, num, na) and nrm.shape == (bz, 1, num, na)

    sm_ref, nrm_ref = ref_forward(locations, features, params)
    # Softmax weights: tight check; the only intended deviation from the f32 reference
    # is the bf16 MXU inputs on the two feature-branch matmuls (f32 accumulation).
    np.testing.assert_allclose(np.asarray(sm), np.asarray(sm_ref), rtol=5e-3, atol=5e-3)
    # Structural check: grouped softmax must sum to one per anchor group.
    np.testing.assert_allclose(np.asarray(sm).sum(-1), 1.0, rtol=0, atol=1e-5)
    # Normalized weights: the min-max rescale divides by (max-min) ~ 0.05-0.3 over only
    # 8 anchors, which amplifies the bf16 rounding of the logits -> looser abs tolerance.
    np.testing.assert_allclose(np.asarray(nrm), np.asarray(nrm_ref), rtol=2e-2, atol=5e-2)

    print("KERNEL_OK")
</pallas_src>

<mosaic_0001>
module attributes {stable_mosaic.version = 11 : i64} {
  func.func @_dis_weight_kernel(%arg0: i32, %arg1: memref<1x128x128xf32, #tpu.memory_space<vmem>>, %arg2: memref<1x8x128xf32, #tpu.memory_space<vmem>>, %arg3: memref<64x128xbf16, #tpu.memory_space<vmem>>, %arg4: memref<32x64xbf16, #tpu.memory_space<vmem>>, %arg5: memref<128x32xf32, #tpu.memory_space<vmem>>, %arg6: memref<192x1xf32, #tpu.memory_space<vmem>>, %arg7: memref<128x1024xf32, #tpu.memory_space<vmem>>, %arg8: memref<1x1x128xf32, #tpu.memory_space<vmem>>, %arg9: memref<1x1x128xf32, #tpu.memory_space<vmem>>) attributes {dimension_semantics = [#tpu.dimension_semantics<parallel>], iteration_bounds = array<i64: 2>, scalar_prefetch = 0 : i64, scratch_operands = 0 : i64, tpu.core_type = #tpu.core_type<tc>, window_params = [{transform_indices = @transform_0, window_bounds = array<i64: 1, 128, 128>}, {transform_indices = @transform_1, window_bounds = array<i64: 1, 8, 128>}, {pipeline_mode = #tpu.pipeline_mode<synchronous>, transform_indices = @transform_2, window_bounds = array<i64: 64, 128>}, {pipeline_mode = #tpu.pipeline_mode<synchronous>, transform_indices = @transform_3, window_bounds = array<i64: 32, 64>}, {pipeline_mode = #tpu.pipeline_mode<synchronous>, transform_indices = @transform_4, window_bounds = array<i64: 128, 32>}, {pipeline_mode = #tpu.pipeline_mode<synchronous>, transform_indices = @transform_5, window_bounds = array<i64: 192, 1>}, {pipeline_mode = #tpu.pipeline_mode<synchronous>, transform_indices = @transform_6, window_bounds = array<i64: 128, 1024>}, {transform_indices = @transform_7, window_bounds = array<i64: 1, 1, 128>}, {transform_indices = @transform_8, window_bounds = array<i64: 1, 1, 128>}]} {
    %c0 = arith.constant 0 : index
    %c0_0 = arith.constant 0 : index
    %c0_1 = arith.constant 0 : index
    %0 = vector.load %arg1[%c0, %c0_0, %c0_1] : memref<1x128x128xf32, #tpu.memory_space<vmem>>, vector<1x128x128xf32>
    %1 = vector.shape_cast %0 : vector<1x128x128xf32> to vector<128x128xf32>
    %2 = arith.truncf %1 : vector<128x128xf32> to vector<128x128xbf16>
    %c0_2 = arith.constant 0 : index
    %c0_3 = arith.constant 0 : index
    %3 = vector.load %arg3[%c0_2, %c0_3] : memref<64x128xbf16, #tpu.memory_space<vmem>>, vector<64x128xbf16>
    %cst = arith.constant dense<0.000000e+00> : vector<64x128xf32>
    %4 = tpu.matmul %3, %2, %cst {dimension_numbers = #tpu.dot_dimension_numbers<[1], [0], [0], [1], [0, 0, 1, 1], [], []>} : vector<64x128xbf16>, vector<128x128xbf16>, vector<64x128xf32> -> vector<64x128xf32>
    %c0_4 = arith.constant 0 : index
    %c0_5 = arith.constant 0 : index
    %5 = vector.load %arg6[%c0_4, %c0_5] : memref<192x1xf32, #tpu.memory_space<vmem>>, vector<64x1xf32>
    %6 = vector.broadcast %5 : vector<64x1xf32> to vector<64x128xf32>
    %7 = arith.addf %4, %6 : vector<64x128xf32>
    %8 = math.tanh %7 : vector<64x128xf32>
    %c0_6 = arith.constant 0 : index
    %c0_7 = arith.constant 0 : index
    %9 = vector.load %arg4[%c0_6, %c0_7] : memref<32x64xbf16, #tpu.memory_space<vmem>>, vector<32x64xbf16>
    %10 = arith.truncf %8 : vector<64x128xf32> to vector<64x128xbf16>
    %cst_8 = arith.constant dense<0.000000e+00> : vector<32x128xf32>
    %11 = tpu.matmul %9, %10, %cst_8 {dimension_numbers = #tpu.dot_dimension_numbers<[1], [0], [0], [1], [0, 0, 1, 1], [], []>} : vector<32x64xbf16>, vector<64x128xbf16>, vector<32x128xf32> -> vector<32x128xf32>
    %c64 = arith.constant 64 : index
    %c0_9 = arith.constant 0 : index
    %12 = vector.load %arg6[%c64, %c0_9] : memref<192x1xf32, #tpu.memory_space<vmem>>, vector<32x1xf32>
    %13 = vector.broadcast %12 : vector<32x1xf32> to vector<32x128xf32>
    %14 = arith.addf %11, %13 : vector<32x128xf32>
    %c0_10 = arith.constant 0 : index
    %c0_11 = arith.constant 0 : index
    %c0_12 = arith.constant 0 : index
    %15 = vector.load %arg2[%c0_10, %c0_11, %c0_12] : memref<1x8x128xf32, #tpu.memory_space<vmem>>, vector<1x8x128xf32>
    %16 = vector.shape_cast %15 : vector<1x8x128xf32> to vector<8x128xf32>
    %c0_13 = arith.constant 0 : index
    %c0_14 = arith.constant 0 : index
    %17 = vector.load %arg5[%c0_13, %c0_14] : memref<128x32xf32, #tpu.memory_space<vmem>>, vector<8x8xf32>
    %cst_15 = arith.constant dense<0.000000e+00> : vector<8x128xf32>
    %18 = tpu.matmul %17, %16, %cst_15 {dimension_numbers = #tpu.dot_dimension_numbers<[1], [0], [0], [1], [0, 0, 1, 1], [], []>} : vector<8x8xf32>, vector<8x128xf32>, vector<8x128xf32> -> vector<8x128xf32>
    %c96 = arith.constant 96 : index
    %c0_16 = arith.constant 0 : index
    %19 = vector.load %arg6[%c96, %c0_16] : memref<192x1xf32, #tpu.memory_space<vmem>>, vector<8x1xf32>
    %20 = vector.broadcast %19 : vector<8x1xf32> to vector<8x128xf32>
    %21 = arith.addf %18, %20 : vector<8x128xf32>
    %22 = math.tanh %21 : vector<8x128xf32>
    %c8 = arith.constant 8 : index
    %c0_17 = arith.constant 0 : index
    %23 = vector.load %arg5[%c8, %c0_17] : memref<128x32xf32, #tpu.memory_space<vmem>>, vector<16x8xf32>
    %cst_18 = arith.constant dense<0.000000e+00> : vector<16x128xf32>
    %24 = tpu.matmul %23, %22, %cst_18 {dimension_numbers = #tpu.dot_dimension_numbers<[1], [0], [0], [1], [0, 0, 1, 1], [], []>} : vector<16x8xf32>, vector<8x128xf32>, vector<16x128xf32> -> vector<16x128xf32>
    %c104 = arith.constant 104 : index
    %c0_19 = arith.constant 0 : index
    %25 = vector.load %arg6[%c104, %c0_19] : memref<192x1xf32, #tpu.memory_space<vmem>>, vector<16x1xf32>
    %26 = vector.broadcast %25 : vector<16x1xf32> to vector<16x128xf32>
    %27 = arith.addf %24, %26 : vector<16x128xf32>
    %28 = math.tanh %27 : vector<16x128xf32>
    %c24 = arith.constant 24 : index
    %c0_20 = arith.constant 0 : index
    %29 = vector.load %arg5[%c24, %c0_20] : memref<128x32xf32, #tpu.memory_space<vmem>>, vector<32x16xf32>
    %cst_21 = arith.constant dense<0.000000e+00> : vector<32x128xf32>
    %30 = tpu.matmul %29, %28, %cst_21 {dimension_numbers = #tpu.dot_dimension_numbers<[1], [0], [0], [1], [0, 0, 1, 1], [], []>} : vector<32x16xf32>, vector<16x128xf32>, vector<32x128xf32> -> vector<32x128xf32>
    %c120 = arith.constant 120 : index
    %c0_22 = arith.constant 0 : index
    %31 = vector.load %arg6[%c120, %c0_22] : memref<192x1xf32, #tpu.memory_space<vmem>>, vector<32x1xf32>
    %32 = vector.broadcast %31 : vector<32x1xf32> to vector<32x128xf32>
    %33 = arith.addf %30, %32 : vector<32x128xf32>
    %c56 = arith.constant 56 : index
    %c0_23 = arith.constant 0 : index
    %34 = vector.load %arg5[%c56, %c0_23] : memref<128x32xf32, #tpu.memory_space<vmem>>, vector<32x32xf32>
    %cst_24 = arith.constant dense<0.000000e+00> : vector<32x128xf32>
    %35 = tpu.matmul %34, %33, %cst_24 {dimension_numbers = #tpu.dot_dimension_numbers<[1], [0], [0], [1], [0, 0, 1, 1], [], []>} : vector<32x32xf32>, vector<32x128xf32>, vector<32x128xf32> -> vector<32x128xf32>
    %c88 = arith.constant 88 : index
    %c0_25 = arith.constant 0 : index
    %36 = vector.load %arg5[%c88, %c0_25] : memref<128x32xf32, #tpu.memory_space<vmem>>, vector<32x32xf32>
    %cst_26 = arith.constant dense<0.000000e+00> : vector<32x128xf32>
    %37 = tpu.matmul %36, %14, %cst_26 {dimension_numbers = #tpu.dot_dimension_numbers<[1], [0], [0], [1], [0, 0, 1, 1], [], []>} : vector<32x32xf32>, vector<32x128xf32>, vector<32x128xf32> -> vector<32x128xf32>
    %38 = arith.addf %35, %37 : vector<32x128xf32>
    %c152 = arith.constant 152 : index
    %c0_27 = arith.constant 0 : index
    %39 = vector.load %arg6[%c152, %c0_27] : memref<192x1xf32, #tpu.memory_space<vmem>>, vector<32x1xf32>
    %40 = vector.broadcast %39 : vector<32x1xf32> to vector<32x128xf32>
    %41 = arith.addf %38, %40 : vector<32x128xf32>
    %42 = math.tanh %41 : vector<32x128xf32>
    %c120_28 = arith.constant 120 : index
    %c0_29 = arith.constant 0 : index
    %43 = vector.load %arg5[%c120_28, %c0_29] : memref<128x32xf32, #tpu.memory_space<vmem>>, vector<1x32xf32>
    %cst_30 = arith.constant dense<0.000000e+00> : vector<1x128xf32>
    %44 = tpu.matmul %43, %42, %cst_30 {dimension_numbers = #tpu.dot_dimension_numbers<[1], [0], [0], [1], [0, 0, 1, 1], [], []>} : vector<1x32xf32>, vector<32x128xf32>, vector<1x128xf32> -> vector<1x128xf32>
    %c184 = arith.constant 184 : index
    %c0_31 = arith.constant 0 : index
    %45 = vector.load %arg6[%c184, %c0_31] : memref<192x1xf32, #tpu.memory_space<vmem>>, vector<1x1xf32>
    %46 = vector.broadcast %45 : vector<1x1xf32> to vector<1x128xf32>
    %47 = arith.addf %44, %46 : vector<1x128xf32>
    %48 = math.tanh %47 : vector<1x128xf32>
    %49 = math.exp %48 : vector<1x128xf32>
    %c0_32 = arith.constant 0 : index
    %c0_33 = arith.constant 0 : index
    %50 = vector.load %arg7[%c0_32, %c0_33] : memref<128x1024xf32, #tpu.memory_space<vmem>>, vector<128x1024xf32>
    %cst_34 = arith.constant dense<0.000000e+00> : vector<1x1024xf32>
    %51 = tpu.matmul %49, %50, %cst_34 {dimension_numbers = #tpu.dot_dimension_numbers<[1], [0], [0], [1], [0, 0, 1, 1], [], []>} : vector<1x128xf32>, vector<128x1024xf32>, vector<1x1024xf32> -> vector<1x1024xf32>
    %52 = vector.extract_strided_slice %51 {offsets = [0, 0], sizes = [1, 128], strides = [1, 1]} : vector<1x1024xf32> to vector<1x128xf32>
    %53 = vector.extract_strided_slice %51 {offsets = [0, 128], sizes = [1, 128], strides = [1, 1]} : vector<1x1024xf32> to vector<1x128xf32>
    %54 = vector.extract_strided_slice %51 {offsets = [0, 256], sizes = [1, 128], strides = [1, 1]} : vector<1x1024xf32> to vector<1x128xf32>
    %55 = vector.extract_strided_slice %51 {offsets = [0, 384], sizes = [1, 128], strides = [1, 1]} : vector<1x1024xf32> to vector<1x128xf32>
    %56 = vector.extract_strided_slice %51 {offsets = [0, 512], sizes = [1, 128], strides = [1, 1]} : vector<1x1024xf32> to vector<1x128xf32>
    %57 = vector.extract_strided_slice %51 {offsets = [0, 640], sizes = [1, 128], strides = [1, 1]} : vector<1x1024xf32> to vector<1x128xf32>
    %58 = vector.extract_strided_slice %51 {offsets = [0, 768], sizes = [1, 128], strides = [1, 1]} : vector<1x1024xf32> to vector<1x128xf32>
    %59 = vector.extract_strided_slice %51 {offsets = [0, 896], sizes = [1, 128], strides = [1, 1]} : vector<1x1024xf32> to vector<1x128xf32>
    %60 = arith.addf %52, %53 : vector<1x128xf32>
    %61 = arith.maximumf %52, %53 : vector<1x128xf32>
    %62 = arith.minimumf %52, %53 : vector<1x128xf32>
    %63 = arith.addf %60, %54 : vector<1x128xf32>
    %64 = arith.maximumf %61, %54 : vector<1x128xf32>
    %65 = arith.minimumf %62, %54 : vector<1x128xf32>
    %66 = arith.addf %63, %55 : vector<1x128xf32>
    %67 = arith.maximumf %64, %55 : vector<1x128xf32>
    %68 = arith.minimumf %65, %55 : vector<1x128xf32>
    %69 = arith.addf %66, %56 : vector<1x128xf32>
    %70 = arith.maximumf %67, %56 : vector<1x128xf32>
    %71 = arith.minimumf %68, %56 : vector<1x128xf32>
    %72 = arith.addf %69, %57 : vector<1x128xf32>
    %73 = arith.maximumf %70, %57 : vector<1x128xf32>
    %74 = arith.minimumf %71, %57 : vector<1x128xf32>
    %75 = arith.addf %72, %58 : vector<1x128xf32>
    %76 = arith.maximumf %73, %58 : vector<1x128xf32>
    %77 = arith.minimumf %74, %58 : vector<1x128xf32>
    %78 = arith.addf %75, %59 : vector<1x128xf32>
    %79 = arith.maximumf %76, %59 : vector<1x128xf32>
    %80 = arith.minimumf %77, %59 : vector<1x128xf32>
    %81 = tpu.reciprocal %78 : vector<1x128xf32> -> vector<1x128xf32>
    %82 = arith.mulf %49, %81 : vector<1x128xf32>
    %83 = arith.mulf %80, %81 : vector<1x128xf32>
    %84 = arith.mulf %79, %81 : vector<1x128xf32>
    %85 = arith.subf %84, %83 : vector<1x128xf32>
    %cst_35 = arith.constant 9.99999997E-7 : f32
    %86 = vector.broadcast %cst_35 : f32 to vector<1x128xf32>
    %87 = arith.addf %85, %86 : vector<1x128xf32>
    %cst_36 = arith.constant 1.00000095 : f32
    %88 = vector.broadcast %cst_36 : f32 to vector<1x128xf32>
    %89 = arith.divf %88, %87 : vector<1x128xf32>
    %90 = arith.subf %82, %83 : vector<1x128xf32>
    %91 = arith.mulf %89, %90 : vector<1x128xf32>
    %92 = vector.shape_cast %82 : vector<1x128xf32> to vector<1x1x128xf32>
    %c0_37 = arith.constant 0 : index
    %c0_38 = arith.constant 0 : index
    %c0_39 = arith.constant 0 : index
    %93 = vector.load %arg8[%c0_37, %c0_38, %c0_39] : memref<1x1x128xf32, #tpu.memory_space<vmem>>, vector<1x1x128xf32>
    tpu.vector_store %arg8[%c0_37, %c0_38, %c0_39], %92 {strides = array<i32>} : memref<1x1x128xf32, #tpu.memory_space<vmem>>, vector<1x1x128xf32>,
    %94 = vector.shape_cast %91 : vector<1x128xf32> to vector<1x1x128xf32>
    %c0_40 = arith.constant 0 : index
    %c0_41 = arith.constant 0 : index
    %c0_42 = arith.constant 0 : index
    %95 = vector.load %arg9[%c0_40, %c0_41, %c0_42] : memref<1x1x128xf32, #tpu.memory_space<vmem>>, vector<1x1x128xf32>
    tpu.vector_store %arg9[%c0_40, %c0_41, %c0_42], %94 {strides = array<i32>} : memref<1x1x128xf32, #tpu.memory_space<vmem>>, vector<1x1x128xf32>,
    return
  }
  func.func @transform_0(%arg0: i32) -> (i32, i32, i32) {
    %c0_i32 = arith.constant 0 : i32
    %c0_i32_0 = arith.constant 0 : i32
    %c0_i32_1 = arith.constant 0 : i32
    return %arg0, %c0_i32, %c0_i32_0 : i32, i32, i32
  }
  func.func @transform_1(%arg0: i32) -> (i32, i32, i32) {
    %c0_i32 = arith.constant 0 : i32
    %c0_i32_0 = arith.constant 0 : i32
    %c0_i32_1 = arith.constant 0 : i32
    return %arg0, %c0_i32, %c0_i32_0 : i32, i32, i32
  }
  func.func @transform_2(%arg0: i32) -> (i32, i32) {
    %c0_i32 = arith.constant 0 : i32
    %c0_i32_0 = arith.constant 0 : i32
    %c0_i32_1 = arith.constant 0 : i32
    return %c0_i32, %c0_i32_0 : i32, i32
  }
  func.func @transform_3(%arg0: i32) -> (i32, i32) {
    %c0_i32 = arith.constant 0 : i32
    %c0_i32_0 = arith.constant 0 : i32
    %c0_i32_1 = arith.constant 0 : i32
    return %c0_i32, %c0_i32_0 : i32, i32
  }
  func.func @transform_4(%arg0: i32) -> (i32, i32) {
    %c0_i32 = arith.constant 0 : i32
    %c0_i32_0 = arith.constant 0 : i32
    %c0_i32_1 = arith.constant 0 : i32
    return %c0_i32, %c0_i32_0 : i32, i32
  }
  func.func @transform_5(%arg0: i32) -> (i32, i32) {
    %c0_i32 = arith.constant 0 : i32
    %c0_i32_0 = arith.constant 0 : i32
    %c0_i32_1 = arith.constant 0 : i32
    return %c0_i32, %c0_i32_0 : i32, i32
  }
  func.func @transform_6(%arg0: i32) -> (i32, i32) {
    %c0_i32 = arith.constant 0 : i32
    %c0_i32_0 = arith.constant 0 : i32
    %c0_i32_1 = arith.constant 0 : i32
    return %c0_i32, %c0_i32_0 : i32, i32
  }
  func.func @transform_7(%arg0: i32) -> (i32, i32, i32) {
    %c0_i32 = arith.constant 0 : i32
    %c0_i32_0 = arith.constant 0 : i32
    %c0_i32_1 = arith.constant 0 : i32
    return %arg0, %c0_i32, %c0_i32_0 : i32, i32, i32
  }
  func.func @transform_8(%arg0: i32) -> (i32, i32, i32) {
    %c0_i32 = arith.constant 0 : i32
    %c0_i32_0 = arith.constant 0 : i32
    %c0_i32_1 = arith.constant 0 : i32
    return %arg0, %c0_i32, %c0_i32_0 : i32, i32, i32
  }
}

</mosaic_0001>

<bundles_post_ra>
// kernel: tpu_custom_call.1
= control target key start
LH: loop header
LB: loop body
LE: loop exit
PB: predicated region body
PF: predicated region fallthrough
CT: control target
= control target key end

     0   :  { %14 = vsyncpa [#allocation3], 0  ;;  %s1983_s0 = inlined_call_operand.vmem [shape: f32[2,128,128], index: 0, kind: input, shape index: {}]   ;;  %s1984_s1 = inlined_call_operand.vmem [shape: f32[2,8,128], index: 1, kind: input, shape index: {}]   ;;  %s1985_s2 = inlined_call_operand.vmem [shape: bf16[64,128], index: 2, kind: input, shape index: {}]   ;;  %s1986_s3 = inlined_call_operand.vmem [shape: bf16[32,64], index: 3, kind: input, shape index: {}]   ;;  %s1987_s4 = inlined_call_operand.vmem [shape: f32[128,32], index: 4, kind: input, shape index: {}]   ;;  %s1988_s5 = inlined_call_operand.vmem [shape: f32[192,1], index: 5, kind: input, shape index: {}]   ;;  %s1989_s6 = inlined_call_operand.hbm [shape: f32[128,1024], index: 6, kind: input, shape index: {}]   ;;  %s1990_s7 = inlined_call_operand.hbm [shape: f32[2,1,128], index: 7, kind: output, shape index: {0}]   ;;  %s1991_s8 = inlined_call_operand.hbm [shape: f32[2,1,128], index: 8, kind: output, shape index: {1}]  }
   0x1   :  { %15 = vsyncpa [#allocation4], 0 }
   0x2   :  { %17 = vsyncpa [#allocation4 + $0x1], 0 }
   0x3   :  { %18 = vsyncpa [#allocation7], 0 }
   0x4   :  { %20 = vsyncpa [#allocation7 + $0x1], 0  ;;  %s1683_s27 = smov 0   ;;  %s1685_s28 = smov 0  }
   0x5   :  { %s1687_s29 = smov 0   ;;  %s1689_s30 = smov 0  }
   0x6 LB: > { %s1704_s9 = sadd.s32 4294967295, %s1632_s30   ;;  %s1345_s10 = sadd.s32 4294967294, %s1632_s30   ;;  %s1632_s30 = sphi %s1689_s30, %s1997_s30   ;;  %s1628_s29 = sphi %s1687_s29, %s1996_s29   ;;  %s1624_s28 = sphi %s1685_s28, %s1995_s28   ;;  %s1620_s27 = sphi %s1683_s27, %s1994_s27  }
   0x7   : > { %s1708_s11 = sadd.s32 1, %s1632_s30   ;;  %s190_s12 = sadd.s32 1, %s1628_s29 }
   0x8   : > { %s187_s13 = ssub.s32 %s1632_s30, %s1708_s11  ;;  %p200_p0 = scmp.ne.s32.totalorder %s1628_s29, %s1624_s28 }
   0x9   : > { %p188_p1 = scmp.eq.s32.totalorder %s187_s13, 0  ;;  %p201_p2 = scmp.eq.s32.totalorder %s1704_s9, 1 }
   0xa   : > { %p206_p3 = scmp.ne.s32.totalorder %s1624_s28, %s1620_s27  ;;  %p207_p4 = scmp.eq.s32.totalorder %s1345_s10, 1 }
   0xb   : > { %s1719_s14 = scalar_select %p188_p1, %s1628_s29, %s190_s12  }
   0xc   : > { %p1721_p5 = por %p201_p2, %p200_p0  ;;  %p1725_p6 = por %p207_p4, %p206_p3 }
   0xd   : > { %p1346_p7 = scmp.ge.s32.totalorder %s1632_s30, 1  ;;  %p240_p8 = scmp.lt.s32.totalorder %s1632_s30, 3 }
   0xe   : > { %p1424_p9 = scmp.eq.s32.totalorder %s1704_s9, 0  ;;  %s263_s19 = sshll.u32 %s1989_s6, 4  ;;  %s264_s19 = int_to_ptr.hbm [resolvable:$true] %s263_s19 }
   0xf   : > { %p241_p10 = pnand %p1346_p7, %p240_p8  ;;  %s1634_s20 = smov [#allocation2]  }
  0x10   : > { %s265_s21 = sshll.u32 %s1634_s20, 4  ;;  %s1635_s22 = smov 1024   ;;  %s266_s21 = int_to_ptr.vmem [resolvable:$true] %s265_s21 }
  0x11   : > { %p1413_p11 = pneg %p241_p10  ;;  %s1636_s23 = smov 64  }
  0x12   : > { %296 = sbr.rel (%p241_p10) target bundleno = 1023 (0x3ff), region = 48 }
  0x13   : > { %p1414_p12 = pnand %p1424_p9, %p1413_p11 }
  0x15   : > { %1416 = dma.hbm_to_vmem [thread:$0]  (!%p1414_p12), %s264_s19, 16384, %s266_s21, [#allocation3], %s1635_s22, %s1635_s22, %s1636_s23  }
  0x17   : > { %1607 = dma.done.wait (%p1424_p9), [#allocation3], 16384  }
  0x18   : > { %1609 = vsyncadd (%p1424_p9), [#allocation3], 4294950912  ;;  %p338_p13 = scmp.lt.s32.totalorder %s1704_s9, 1  ;;  %v1637_v0 = vmov 0   ;;  %vm565_vm0 = vcmask 64512   ;;  %v559_v1 = vld [vmem:[%s1988_s5 + $0x60] sm:$0xff] }
  0x19   : > { %1463 = vset.pattern.permute.xlu0 %v1637_v0  ;;  %1464 = vset.pattern.permute.xlu1 %v1637_v0  ;;  %v558_v3 = vld [vmem:[%s1987_s4] sm:$0xff]  ;;  %v386_v12 = vld [vmem:[%s1988_s5 + $0x30] sm:$0xff]  ;;  %v387_v13 = vld [vmem:[%s1988_s5 + $0x38] sm:$0xff]  ;;  %vm531_vm1 = vcmask 523264   ;;  %vm663_vm2 = vcmask 130048   ;;  %vm713_vm3 = vcmask 261120  }
  0x1a   : > { %s339_s24 = scalar_select %p338_p13, %s1704_s9, 1  ;;  %1465 = vset.pattern.permute.xlu2 %v1637_v0  ;;  %562 = vperm.xlu0 %1463, %v559_v1   ;;  %v384_v18 = vld [vmem:[%s1988_s5 + $0x20] sm:$0xff]  ;;  %v383_v21 = vld [vmem:[%s1988_s5 + $0x18] sm:$0xff]  ;;  %v593_v26 = vld [vmem:[%s1988_s5 + $0x70] sm:$0xff] }
  0x1b   : > { %425 = vperm.xlu1 %1464, %v387_v13   ;;  %v380_v29 = vld [vmem:[%s1988_s5] sm:$0xff]  ;;  %v381_v34 = vld [vmem:[%s1988_s5 + $0x8] sm:$0xff]  ;;  %v642_v35 = vld [vmem:[%s1988_s5 + $0x90] sm:$0xff]  ;;  %s1928_s22 = sand.u32 1, %s1624_s28   ;;  %s1554_s21 = scalar_lea.hbm %s1990_s7, 2 }
  0x1c   : > { %s1398_s25 = sshll.u32 %s339_s24, 7  ;;  %s1353_s26 = sshll.u32 %s339_s24, 3  ;;  %v1399_v36 = vld [vmem:[%s1985_s2] sm:$0xff]  ;;  %v498_v37 = vld [vmem:[%s1988_s5 + $0x48] sm:$0xff]  ;;  %v639_v38 = vld [vmem:[%s1988_s5 + $0x78] sm:$0xff] }
  0x1d   : > { %s1746_s13 = scalar_lea.vmem %s1983_s0, %s1398_s25  ;;  %s346_s19 = scalar_lea.vmem %s1984_s1, %s1353_s26  ;;  %v1400_v39 = vld [vmem:[%s1985_s2 + $0x8] sm:$0xff]  ;;  %v797_v41 = vld [vmem:[%s1988_s5 + $0xa0] sm:$0xff]  ;;  %v382_v42 = vld [vmem:[%s1988_s5 + $0x10] sm:$0xff] }
  0x1e   : > { %v557_v2 = vld [vmem:[%s346_s19] sm:$0xff]  ;;  %v362_v4 = vld [vmem:[%s1746_s13 + $0x70] sm:$0xff]  ;;  %v363_v5 = vld [vmem:[%s1746_s13 + $0x78] sm:$0xff]  ;;  %s1221_s25 = scalar_lea.hbm %s1990_s7, %s1704_s9  ;;  %s331_s26 = scalar_lea.vmem [#allocation5], %s1928_s22 }
  0x1f   : > { %584 = vmatpush.msra.mxu2 %v557_v2  ;;  %v360_v6 = vld [vmem:[%s1746_s13 + $0x60] sm:$0xff]  ;;  %v371_v7 = vpack.c.bf16 %v363_v5, %v362_v4  ;;  %v361_v8 = vld [vmem:[%s1746_s13 + $0x68] sm:$0xff]  ;;  %v358_v10 = vld [vmem:[%s1746_s13 + $0x50] sm:$0xff]  ;;  %s1935_s10 = sshll.u32 %s331_s26, 4  ;;  %s1225_s12 = sshll.u32 %s1221_s25, 4  ;;  %s1224_s10 = int_to_ptr.vmem [resolvable:$true] %s1935_s10  ;;  %s1226_s12 = int_to_ptr.hbm [resolvable:$true] %s1225_s12 }
  0x20   : > { %1380 = vmatmul.msk.f32.vlgmr.msra.gmra.mxu2 %vm565_vm0, %v558_v3  ;;  %v370_v9 = vpack.c.bf16 %v361_v8, %v360_v6  ;;  %v359_v11 = vld [vmem:[%s1746_s13 + $0x58] sm:$0xff]  ;;  %v356_v15 = vld [vmem:[%s1746_s13 + $0x40] sm:$0xff]  ;;  %v357_v16 = vld [vmem:[%s1746_s13 + $0x48] sm:$0xff]  ;;  %s1209_s17 = scalar_lea.sflag [#allocation4], %s1928_s22  ;;  %s1548_s18 = sshra.s32 %s1226_s12, 4  ;;  %s1549_s18 = int_to_ptr.hbm [resolvable:$true] %s1548_s18 }
  0x21   : > { %452 = vmatpush.bf16.msra.mxu0 %v371_v7  ;;  %v369_v14 = vpack.c.bf16 %v359_v11, %v358_v10  ;;  %v368_v17 = vpack.c.bf16 %v357_v16, %v356_v15  ;;  %v354_v19 = vld [vmem:[%s1746_s13 + $0x30] sm:$0xff]  ;;  %v355_v20 = vld [vmem:[%s1746_s13 + $0x38] sm:$0xff]  ;;  %v352_v23 = vld [vmem:[%s1746_s13 + $0x20] sm:$0xff]  ;;  %p1555_p3 = scmp.lt.s32.totalorder %s1549_s18, %s1990_s7 }
  0x22   : > { %420 = vperm.xlu0 %1463, %v386_v12   ;;  %v367_v22 = vpack.c.bf16 %v355_v20, %v354_v19  ;;  %v353_v24 = vld [vmem:[%s1746_s13 + $0x28] sm:$0xff]  ;;  %v350_v27 = vld [vmem:[%s1746_s13 + $0x10] sm:$0xff]  ;;  %v351_v28 = vld [vmem:[%s1746_s13 + $0x18] sm:$0xff] }
  0x23   : > { %410 = vperm.xlu1 %1464, %v384_v18   ;;  %v366_v25 = vpack.c.bf16 %v353_v24, %v352_v23  ;;  %v365_v30 = vpack.c.bf16 %v351_v28, %v350_v27  ;;  %v348_v31 = vld [vmem:[%s1746_s13] sm:$0xff]  ;;  %v349_v32 = vld [vmem:[%s1746_s13 + $0x8] sm:$0xff]  ;;  %v1401_v43 = vld [vmem:[%s1985_s2 + $0x10] sm:$0xff]  ;;  %s1550_s13 = scalar_lea.hbm %s1549_s18, 1 }
  0x24   : > { %v364_v33 = vpack.c.bf16 %v349_v32, %v348_v31  ;;  %v385_v40 = vld [vmem:[%s1988_s5 + $0x28] sm:$0xff]  ;;  %v1402_v44 = vld [vmem:[%s1985_s2 + $0x18] sm:$0xff]  ;;  %v499_v45 = vld [vmem:[%s1988_s5 + $0x50] sm:$0xff]  ;;  %p1551_p0 = scmp.ne.s32.totalorder %s1549_s18, %s1550_s13  ;;  %p1556_p4 = scmp.lt.s32.totalorder %s1554_s21, %s1550_s13 }
  0x25   : > { %453 = vmatpush.bf16.msra.mxu0 %v370_v9  ;;  %415 = vperm.xlu2 %1465, %v385_v40   ;;  %v640_v46 = vld [vmem:[%s1988_s5 + $0x80] sm:$0xff]  ;;  %v592_v47 = vld [vmem:[%s1988_s5 + $0x68] sm:$0xff]  ;;  %v799_v48 = vld [vmem:[%s1988_s5 + $0xb0] sm:$0xff] }
  0x26   : > { %v500_v49 = vld [vmem:[%s1988_s5 + $0x58] sm:$0xff]  ;;  %v641_v51 = vld [vmem:[%s1988_s5 + $0x88] sm:$0xff]  ;;  %v497_v52 = vld [vmem:[%s1988_s5 + $0x40] sm:$0xff]  ;;  %p1552_p1 = pnand %p1551_p0, %p1721_p5  ;;  %p1557_p7 = por %p1556_p4, %p1555_p3 }
  0x27   : > { %v796_v50 = vld [vmem:[%s1988_s5 + $0x98] sm:$0xff]  ;;  %v798_v56 = vld [vmem:[%s1988_s5 + $0xa8] sm:$0xff]  ;;  %v591_v60 = vld [vmem:[%s1987_s4 + $0x10] sm:$0xff] }
  0x28   : > { %v590_v57 = vld [vmem:[%s1987_s4 + $0x8] sm:$0xff]  ;;  %v829_v59 = vld [vmem:[%s1988_s5 + $0xb8] sm:$0x1]  ;;  %p1553_p2 = pneg %p1552_p1 }
  0x29   : > { %454 = vmatpush.bf16.msra.mxu0 %v369_v14 }
  0x2a   : > { %405 = vperm.xlu0 %1463, %v383_v21   ;;  %p1558_p8 = pnand %p1557_p7, %p1553_p2 }
  0x2b   : > { %601 = vperm.xlu1 %1464, %v593_v26  }
  0x2d   : > { %455 = vmatpush.bf16.msra.mxu0 %v368_v17  ;;  %400 = vperm.xlu2 %1465, %v382_v42   ;;  %v635_v42 = vld [vmem:[%s1987_s4 + $0x18] sm:$0xff] }
  0x31   : > { %456 = vmatpush.bf16.msra.mxu0 %v367_v22 }
  0x32   : > { %390 = vperm.xlu0 %1463, %v380_v29  }
  0x33   : > { %395 = vperm.xlu1 %1464, %v381_v34   ;;  %v1403_v34 = vld [vmem:[%s1986_s3] sm:$0xff] }
  0x35   : > { %457 = vmatpush.bf16.msra.mxu0 %v366_v25  ;;  %596 = vperm.xlu2 %1465, %v592_v47  }
  0x39   : > { %458 = vmatpush.bf16.msra.mxu0 %v365_v30 }
  0x3a   : > { %660 = vperm.xlu0 %1463, %v642_v35   ;;  %v1404_v35 = vld [vmem:[%s1986_s3 + $0x8] sm:$0xff] }
  0x3b   : > { %513 = vperm.xlu1 %1464, %v499_v45   ;;  %v637_v45 = vld [vmem:[%s1987_s4 + $0x28] sm:$0xff] }
  0x3d   : > { %459 = vmatpush.bf16.msra.mxu0 %v364_v33  ;;  %518 = vperm.xlu2 %1465, %v500_v49  }
  0x40   : > { %460 = vmatmul.bf16.vlgmr.msra.gmra.mxu0 %v1399_v36 }
  0x42   : > { %508 = vperm.xlu0 %1463, %v498_v37  }
  0x43   : > { %650 = vperm.xlu1 %1464, %v640_v46   ;;  %v638_v46 = vld [vmem:[%s1987_s4 + $0x30] sm:$0xff] }
  0x45   : > { %655 = vperm.xlu2 %1465, %v641_v51  }
  0x4a   : > { %645 = vperm.xlu0 %1463, %v639_v38  }
  0x4b   : > { %817 = vperm.xlu1 %1464, %v799_v48  }
  0x4d   : > { %503 = vperm.xlu2 %1465, %v497_v52  }
  0x50   : > { %465 = vmatmul.bf16.gmra.mxu0 %v1400_v39 }
  0x52   : > { %807 = vperm.xlu0 %1463, %v797_v41  }
  0x53   : > { %802 = vperm.xlu1 %1464, %v796_v50  }
  0x55   : > { %812 = vperm.xlu2 %1465, %v798_v56  }
  0x5d   : > { %832 = vperm.xlu2 %1465, %v829_v59  }
  0x60   : > { %470 = vmatmul.bf16.gmra.mxu0 %v1401_v43 }
  0x70   : > { %475 = vmatmul.bf16.gmra.mxu0 %v1402_v44  ;;  %v636_v44 = vld [vmem:[%s1987_s4 + $0x20] sm:$0xff] }
  0x7f   : > { %v416_v6 = vpop.permute.xlu2 %415 }
  0x87   : > { %v401_v14 = vpop.permute.xlu2 %400 }
  0x8c   : > { %v563_v53 = vpop.permute.xlu0 %562 }
  0x8d   : > { %v426_v1 = vpop.permute.xlu1 %425 }
  0x8f   : > { %v597_v37 = vpop.permute.xlu2 %596 }
  0x94   : > { %v421_v5 = vpop.permute.xlu0 %420 }
  0x95   : > { %v411_v4 = vpop.permute.xlu1 %410 }
  0x97   : > { %v519_v49 = vpop.permute.xlu2 %518 }
  0x9c   : > { %v406_v12 = vpop.permute.xlu0 %405 }
  0x9d   : > { %v602_v8 = vpop.permute.xlu1 %601 }
  0x9f   : > { %v656_v52 = vpop.permute.xlu2 %655 }
  0xa3   : > { %v586_v54 = vpop.f32.mrf.mxu2 }
  0xa4   : > { %v587_v55 = vadd.f32 %v586_v54, %v563_v53  ;;  %v391_v24 = vpop.permute.xlu0 %390 }
  0xa5   : > { %v396_v19 = vpop.permute.xlu1 %395 }
  0xa6   : > { %1466 = vtanh.f32 %v587_v55 }
  0xa7   : > { %v504_v59 = vpop.permute.xlu2 %503 }
  0xac   : > { %v1467_v58 = vpop.eup %1466  ;;  %v661_v51 = vpop.permute.xlu0 %660 }
  0xad   : > { %625 = vmatpush.msra.mxu3 %v1467_v58  ;;  %v514_v55 = vpop.permute.xlu1 %513 }
  0xae   : > { %1381 = vmatmul.msk.f32.vlgmr.msra.gmra.mxu3 %vm565_vm0, %v590_v57 }
  0xb4   : > { %v509_v57 = vpop.permute.xlu0 %508 }
  0xb6   : > { %1382 = vmatmul.msk.f32.gmra.mxu3 %vm565_vm0, %v591_v60 }
  0xbd   : > { %v461_v61 = vpop.f32.mrf.mxu0 }
  0xbe   : > { %v462_v26 = vadd.f32 %v461_v61, %v391_v24  ;;  %v974_v24 = vld [vmem:[#allocation2 + $0x388] sm:$0xff] }
  0xc5   : > { %v463_v62 = vpop.f32.mrf.mxu0 }
  0xc6   : > { %v464_v23 = vadd.f32 %v463_v62, %v396_v19  ;;  %v709_v62 = vld [vmem:[%s1987_s4 + $0x58] sm:$0xff]  ;;  %v981_v19 = vld [vmem:[#allocation2 + $0x3c0] sm:$0xff] }
  0xcd   : > { %v466_v63 = vpop.f32.mrf.mxu0 }
  0xce   : > { %v467_v16 = vadd.f32 %v466_v63, %v401_v14  ;;  %v710_v63 = vld [vmem:[%s1987_s4 + $0x60] sm:$0xff]  ;;  %v708_v14 = vld [vmem:[%s1987_s4 + $0x50] sm:$0xff] }
  0xd5   : > { %v468_v0 = vpop.f32.mrf.mxu0 }
  0xd6   : > { %v469_v17 = vadd.f32 %v468_v0, %v406_v12  ;;  %v706_v12 = vld [vmem:[%s1987_s4 + $0x40] sm:$0xff] }
  0xdd   : > { %v471_v2 = vpop.f32.mrf.mxu0 }
  0xde   : > { %v472_v9 = vadd.f32 %v471_v2, %v411_v4 }
  0xe0   : > { %1468 = vtanh.f32 %v472_v9  ;;  %v646_v9 = vpop.permute.xlu0 %645 }
  0xe5   : > { %v473_v3 = vpop.f32.mrf.mxu0 }
  0xe6   : > { %v474_v10 = vadd.f32 %v473_v3, %v416_v6  ;;  %v1469_v18 = vpop.eup %1468  ;;  %v712_v3 = vld [vmem:[%s1987_s4 + $0x70] sm:$0xff] }
  0xe8   : > { %1470 = vtanh.f32 %v474_v10 }
  0xed   : > { %v476_v7 = vpop.f32.mrf.mxu0 }
  0xee   : > { %v477_v11 = vadd.f32 %v476_v7, %v421_v5  ;;  %v1471_v20 = vpop.eup %1470  ;;  %v651_v7 = vpop.permute.xlu1 %650 }
  0xef   : > { %v495_v27 = vpack.c.bf16 %v1471_v20, %v1469_v18  ;;  %v973_v20 = vld [vmem:[#allocation2 + $0x380] sm:$0xff] }
  0xf0   : > { %1472 = vtanh.f32 %v477_v11  ;;  %v705_v11 = vld [vmem:[%s1987_s4 + $0x38] sm:$0xff] }
  0xf5   : > { %v478_v13 = vpop.f32.mrf.mxu0 }
  0xf6   : > { %v479_v15 = vadd.f32 %v478_v13, %v426_v1  ;;  %v1473_v21 = vpop.eup %1472  ;;  %v711_v1 = vld [vmem:[%s1987_s4 + $0x68] sm:$0xff] }
  0xf7   : > { %v707_v13 = vld [vmem:[%s1987_s4 + $0x48] sm:$0xff] }
  0xf8   : > { %1474 = vtanh.f32 %v479_v15 }
  0xf9   : > { %1476 = vtanh.f32 %v467_v16 }
  0xfa   : > { %1478 = vtanh.f32 %v469_v17 }
  0xfb   : > { %1480 = vtanh.f32 %v464_v23  ;;  %v965_v23 = vld [vmem:[#allocation2 + $0x340] sm:$0xff] }
  0xfc   : > { %1482 = vtanh.f32 %v462_v26  ;;  %v957_v26 = vld [vmem:[#allocation2 + $0x300] sm:$0xff] }
  0xfe   : > { %v1475_v22 = vpop.eup %1474 }
  0xff   : > { %v496_v25 = vpack.c.bf16 %v1475_v22, %v1473_v21  ;;  %v1477_v28 = vpop.eup %1476  ;;  %v982_v22 = vld [vmem:[#allocation2 + $0x3c8] sm:$0xff] }
 0x100   : > { %v1479_v29 = vpop.eup %1478 }
 0x101   : > { %542 = vmatpush.bf16.msra.mxu1 %v496_v25  ;;  %v494_v30 = vpack.c.bf16 %v1479_v29, %v1477_v28  ;;  %v1481_v31 = vpop.eup %1480  ;;  %v966_v25 = vld [vmem:[#allocation2 + $0x348] sm:$0xff]  ;;  %v949_v29 = vld [vmem:[#allocation2 + $0x2c0] sm:$0xff] }
 0x102   : > { %v1483_v32 = vpop.eup %1482  ;;  %v958_v28 = vld [vmem:[#allocation2 + $0x308] sm:$0xff] }
 0x103   : > { %v493_v33 = vpack.c.bf16 %v1481_v31, %v1483_v32  ;;  %v941_v31 = vld [vmem:[#allocation2 + $0x280] sm:$0xff]  ;;  %v818_v32 = vpop.permute.xlu1 %817 }
 0x105   : > { %543 = vmatpush.bf16.msra.mxu1 %v495_v27 }
 0x109   : > { %544 = vmatpush.bf16.msra.mxu1 %v494_v30  ;;  %v950_v30 = vld [vmem:[#allocation2 + $0x2c8] sm:$0xff] }
 0x10d   : > { %545 = vmatpush.bf16.msra.mxu1 %v493_v33  ;;  %v942_v33 = vld [vmem:[#allocation2 + $0x288] sm:$0xff] }
 0x110   : > { %1378 = vmatmul.msk.bf16.vlgmr.msra.gmra.mxu1 %vm531_vm1, %v1403_v34  ;;  %v933_v34 = vld [vmem:[#allocation2 + $0x240] sm:$0xff] }
 0x120   : > { %1379 = vmatmul.msk.bf16.gmra.mxu1 %vm531_vm1, %v1404_v35 }
 0x131   : > { %v627_v36 = vpop.f32.mrf.mxu3 }
 0x132   : > { %v628_v39 = vadd.f32 %v627_v36, %v597_v37  ;;  %v934_v36 = vld [vmem:[#allocation2 + $0x248] sm:$0xff] }
 0x139   : > { %v630_v38 = vpop.f32.mrf.mxu3 }
 0x13a   : > { %v631_v40 = vadd.f32 %v630_v38, %v602_v8  ;;  %v925_v38 = vld [vmem:[#allocation2 + $0x200] sm:$0xff] }
 0x13c   : > { %1484 = vtanh.f32 %v631_v40  ;;  %v926_v40 = vld [vmem:[#allocation2 + $0x208] sm:$0xff] }
 0x13d   : > { %1486 = vtanh.f32 %v628_v39 }
 0x142   : > { %v1485_v41 = vpop.eup %1484 }
 0x143   : > { %690 = vmatpush.msrb.mxu2 %v1485_v41  ;;  %v1487_v43 = vpop.eup %1486 }
 0x145   : > { %691 = vmatpush.msrb.mxu2 %v1487_v43  ;;  %v917_v43 = vld [vmem:[#allocation2 + $0x1c0] sm:$0xff] }
 0x146   : > { %1383 = vmatmul.msk.f32.vlgmr.msrb.gmra.mxu2 %vm663_vm2, %v635_v42 }
 0x14e   : > { %1384 = vmatmul.msk.f32.gmra.mxu2 %vm663_vm2, %v636_v44  ;;  %v813_v44 = vpop.permute.xlu2 %812 }
 0x156   : > { %1385 = vmatmul.msk.f32.gmra.mxu2 %vm663_vm2, %v637_v45  ;;  %v918_v45 = vld [vmem:[#allocation2 + $0x1c8] sm:$0xff] }
 0x15e   : > { %1386 = vmatmul.msk.f32.gmra.mxu2 %vm663_vm2, %v638_v46 }
 0x18d   : > { %v547_v47 = vpop.f32.mrf.mxu1 }
 0x18e   : > { %v548_v60 = vadd.f32 %v547_v47, %v504_v59  ;;  %v885_v59 = vld [vmem:[#allocation2 + $0xc0] sm:$0xff] }
 0x195   : > { %v549_v48 = vpop.f32.mrf.mxu1 }
 0x196   : > { %v550_v58 = vadd.f32 %v549_v48, %v509_v57  ;;  %v893_v57 = vld [vmem:[#allocation2 + $0x100] sm:$0xff] }
 0x19d   : > { %v552_v50 = vpop.f32.mrf.mxu1 }
 0x19e   : > { %v553_v56 = vadd.f32 %v552_v50, %v514_v55  ;;  %v808_v50 = vpop.permute.xlu0 %807  ;;  %v902_v55 = vld [vmem:[#allocation2 + $0x148] sm:$0xff] }
 0x1a5   : > { %v554_v53 = vpop.f32.mrf.mxu1 }
 0x1a6   : > { %v555_v54 = vadd.f32 %v554_v53, %v519_v49  ;;  %v909_v49 = vld [vmem:[#allocation2 + $0x180] sm:$0xff] }
 0x1a7   : > { %v901_v53 = vld [vmem:[#allocation2 + $0x140] sm:$0xff] }
 0x1a8   : > { %738 = vmatpush.msrb.mxu3 %v555_v54  ;;  %v803_v54 = vpop.permute.xlu1 %802 }
 0x1aa   : > { %739 = vmatpush.msrb.mxu3 %v553_v56 }
 0x1ac   : > { %740 = vmatpush.msrb.mxu3 %v550_v58  ;;  %v894_v58 = vld [vmem:[#allocation2 + $0x108] sm:$0xff] }
 0x1ae   : > { %741 = vmatpush.msrb.mxu3 %v548_v60  ;;  %v985_v60 = vld [vmem:[#allocation2 + $0x3e0] sm:$0xff] }
 0x1af   : > { %1387 = vmatmul.msk.f32.vlgmr.msrb.gmra.mxu3 %vm713_vm3, %v709_v62  ;;  %1069 = vmatpush.msrb.mxu0 %v985_v60  ;;  %v896_v60 = vld [vmem:[#allocation2 + $0x118] sm:$0xff] }
 0x1b0   : > { %989 = vmatpush.msra.mxu3 %v981_v19  ;;  %v945_v19 = vld [vmem:[#allocation2 + $0x2a0] sm:$0xff] }
 0x1b2   : > { %990 = vmatpush.msra.mxu3 %v973_v20  ;;  %v967_v20 = vld [vmem:[#allocation2 + $0x350] sm:$0xff] }
 0x1b4   : > { %991 = vmatpush.msra.mxu3 %v965_v23  ;;  %v959_v23 = vld [vmem:[#allocation2 + $0x310] sm:$0xff] }
 0x1b6   : > { %992 = vmatpush.msra.mxu3 %v957_v26  ;;  %v944_v26 = vld [vmem:[#allocation2 + $0x298] sm:$0xff] }
 0x1b7   : > { %1388 = vmatmul.msk.f32.gmra.mxu3 %vm713_vm3, %v710_v63  ;;  %v877_v63 = vld [vmem:[#allocation2 + $0x80] sm:$0xff] }
 0x1b8   : > { %993 = vmatpush.msra.mxu3 %v949_v29  ;;  %v927_v29 = vld [vmem:[#allocation2 + $0x210] sm:$0xff] }
 0x1ba   : > { %994 = vmatpush.msra.mxu3 %v941_v31  ;;  %v911_v31 = vld [vmem:[#allocation2 + $0x190] sm:$0xff] }
 0x1bc   : > { %995 = vmatpush.msra.mxu3 %v933_v34  ;;  %v887_v34 = vld [vmem:[#allocation2 + $0xd0] sm:$0xff] }
 0x1be   : > { %996 = vmatpush.msra.mxu3 %v925_v38  ;;  %v987_v38 = vld [vmem:[#allocation2 + $0x3f0] sm:$0xff] }
 0x1bf   : > { %1389 = vmatmul.msk.f32.gmra.mxu3 %vm713_vm3, %v711_v1  ;;  %v878_v1 = vld [vmem:[#allocation2 + $0x88] sm:$0xff] }
 0x1c0   : > { %997 = vmatpush.msra.mxu3 %v917_v43  ;;  %v971_v43 = vld [vmem:[#allocation2 + $0x370] sm:$0xff] }
 0x1c2   : > { %998 = vmatpush.msra.mxu3 %v909_v49  ;;  %v921_v49 = vld [vmem:[#allocation2 + $0x1e0] sm:$0xff] }
 0x1c4   : > { %999 = vmatpush.msra.mxu3 %v901_v53  ;;  %v913_v53 = vld [vmem:[#allocation2 + $0x1a0] sm:$0xff] }
 0x1c6   : > { %1000 = vmatpush.msra.mxu3 %v893_v57  ;;  %v905_v57 = vld [vmem:[#allocation2 + $0x160] sm:$0xff] }
 0x1c7   : > { %1390 = vmatmul.msk.f32.gmra.mxu3 %vm713_vm3, %v712_v3  ;;  %v869_v3 = vld [vmem:[#allocation2 + $0x40] sm:$0xff] }
 0x1c8   : > { %1001 = vmatpush.msra.mxu3 %v885_v59  ;;  %v939_v59 = vld [vmem:[#allocation2 + $0x270] sm:$0xff] }
 0x1c9   : > { %v693_v61 = vpop.f32.mrf.mxu2 }
 0x1ca   : > { %v694_v10 = vadd.f32 %v693_v61, %v646_v9  ;;  %v886_v61 = vld [vmem:[#allocation2 + $0xc8] sm:$0xff]  ;;  %1002 = vmatpush.msra.mxu3 %v877_v63  ;;  %v984_v9 = vld [vmem:[#allocation2 + $0x3d8] sm:$0xff]  ;;  %v931_v63 = vld [vmem:[#allocation2 + $0x230] sm:$0xff] }
 0x1cc   : > { %1003 = vmatpush.msra.mxu3 %v869_v3  ;;  %v923_v3 = vld [vmem:[#allocation2 + $0x1f0] sm:$0xff] }
 0x1d1   : > { %v696_v0 = vpop.f32.mrf.mxu2 }
 0x1d2   : > { %v697_v8 = vadd.f32 %v696_v0, %v651_v7  ;;  %v977_v0 = vld [vmem:[#allocation2 + $0x3a0] sm:$0xff] }
 0x1d3   : > { %1070 = vmatpush.msrb.mxu0 %v977_v0  ;;  %v861_v7 = vld [vmem:[#allocation2] sm:$0xff]  ;;  %v888_v0 = vld [vmem:[#allocation2 + $0xd8] sm:$0xff] }
 0x1d4   : > { %1004 = vmatpush.msra.mxu3 %v861_v7  ;;  %v915_v7 = vld [vmem:[#allocation2 + $0x1b0] sm:$0xff] }
 0x1d6   : > { %1049 = vmatpush.msrb.mxu3 %v984_v9  ;;  %v873_v9 = vld [vmem:[#allocation2 + $0x60] sm:$0xff] }
 0x1d9   : > { %v699_v2 = vpop.f32.mrf.mxu2 }
 0x1da   : > { %v700_v6 = vadd.f32 %v699_v2, %v656_v52 }
 0x1e1   : > { %v702_v4 = vpop.f32.mrf.mxu2 }
 0x1e2   : > { %v703_v5 = vadd.f32 %v702_v4, %v661_v51  ;;  %v910_v51 = vld [vmem:[#allocation2 + $0x188] sm:$0xff]  ;;  %v969_v4 = vld [vmem:[#allocation2 + $0x360] sm:$0xff] }
 0x1e3   : > { %1071 = vmatpush.msrb.mxu0 %v969_v4  ;;  %v880_v4 = vld [vmem:[#allocation2 + $0x98] sm:$0xff] }
 0x1e4   : > { %779 = vmatpush.msra.mxu2 %v703_v5  ;;  %v870_v5 = vld [vmem:[#allocation2 + $0x48] sm:$0xff] }
 0x1e6   : > { %780 = vmatpush.msra.mxu2 %v700_v6 }
 0x1e8   : > { %781 = vmatpush.msra.mxu2 %v697_v8  ;;  %v828_v8 = vld [vmem:[%s1987_s4 + $0x78] sm:$0x1] }
 0x1ea   : > { %782 = vmatpush.msra.mxu2 %v694_v10  ;;  %v961_v10 = vld [vmem:[#allocation2 + $0x320] sm:$0xff] }
 0x1eb   : > { %1391 = vmatmul.msk.f32.vlgmr.msra.gmra.mxu2 %vm713_vm3, %v705_v11  ;;  %1072 = vmatpush.msrb.mxu0 %v961_v10  ;;  %v906_v10 = vld [vmem:[#allocation2 + $0x168] sm:$0xff] }
 0x1ec   : > { %1009 = vmatpush.msrb.mxu2 %v982_v22  ;;  %v960_v22 = vld [vmem:[#allocation2 + $0x318] sm:$0xff] }
 0x1ee   : > { %1010 = vmatpush.msrb.mxu2 %v974_v24  ;;  %v952_v24 = vld [vmem:[#allocation2 + $0x2d8] sm:$0xff] }
 0x1f0   : > { %1011 = vmatpush.msrb.mxu2 %v966_v25  ;;  %v951_v25 = vld [vmem:[#allocation2 + $0x2d0] sm:$0xff] }
 0x1f2   : > { %1012 = vmatpush.msrb.mxu2 %v958_v28  ;;  %v935_v28 = vld [vmem:[#allocation2 + $0x250] sm:$0xff] }
 0x1f3   : > { %1392 = vmatmul.msk.f32.gmra.mxu2 %vm713_vm3, %v706_v12  ;;  %v983_v12 = vld [vmem:[#allocation2 + $0x3d0] sm:$0xff] }
 0x1f4   : > { %1013 = vmatpush.msrb.mxu2 %v950_v30  ;;  %v919_v30 = vld [vmem:[#allocation2 + $0x1d0] sm:$0xff] }
 0x1f6   : > { %1014 = vmatpush.msrb.mxu2 %v942_v33  ;;  %v895_v33 = vld [vmem:[#allocation2 + $0x110] sm:$0xff] }
 0x1f8   : > { %1015 = vmatpush.msrb.mxu2 %v934_v36  ;;  %v871_v36 = vld [vmem:[#allocation2 + $0x50] sm:$0xff] }
 0x1fa   : > { %1016 = vmatpush.msrb.mxu2 %v926_v40  ;;  %v936_v40 = vld [vmem:[#allocation2 + $0x258] sm:$0xff] }
 0x1fb   : > { %1393 = vmatmul.msk.f32.gmra.mxu2 %vm713_vm3, %v707_v13  ;;  %v862_v13 = vld [vmem:[#allocation2 + $0x8] sm:$0xff] }
 0x1fc   : > { %1017 = vmatpush.msrb.mxu2 %v918_v45  ;;  %v929_v45 = vld [vmem:[#allocation2 + $0x220] sm:$0xff] }
 0x1fe   : > { %1018 = vmatpush.msrb.mxu2 %v910_v51  ;;  %v955_v51 = vld [vmem:[#allocation2 + $0x2f0] sm:$0xff] }
 0x200   : > { %1019 = vmatpush.msrb.mxu2 %v902_v55  ;;  %v947_v55 = vld [vmem:[#allocation2 + $0x2b0] sm:$0xff] }
 0x202   : > { %1020 = vmatpush.msrb.mxu2 %v894_v58  ;;  %v938_v58 = vld [vmem:[#allocation2 + $0x268] sm:$0xff] }
 0x203   : > { %1394 = vmatmul.msk.f32.gmra.mxu2 %vm713_vm3, %v708_v14  ;;  %v976_v14 = vld [vmem:[#allocation2 + $0x398] sm:$0xff] }
 0x204   : > { %1021 = vmatpush.msrb.mxu2 %v886_v61  ;;  %1050 = vmatpush.msrb.mxu3 %v976_v14  ;;  %v897_v61 = vld [vmem:[#allocation2 + $0x120] sm:$0xff]  ;;  %v898_v14 = vld [vmem:[#allocation2 + $0x128] sm:$0xff] }
 0x206   : > { %1022 = vmatpush.msrb.mxu2 %v878_v1  ;;  %v889_v1 = vld [vmem:[#allocation2 + $0xe0] sm:$0xff] }
 0x208   : > { %1023 = vmatpush.msrb.mxu2 %v870_v5  ;;  %v881_v5 = vld [vmem:[#allocation2 + $0xa0] sm:$0xff] }
 0x20a   : > { %1024 = vmatpush.msrb.mxu2 %v862_v13  ;;  %v865_v13 = vld [vmem:[#allocation2 + $0x20] sm:$0xff] }
 0x232   : > { %v743_v15 = vpop.f32.mrf.mxu3 }
 0x23a   : > { %v746_v17 = vpop.f32.mrf.mxu3 }
 0x242   : > { %v749_v21 = vpop.f32.mrf.mxu3 }
 0x24a   : > { %v752_v35 = vpop.f32.mrf.mxu3 }
 0x26e   : > { %v784_v16 = vpop.f32.mrf.mxu2 }
 0x26f   : > { %v785_v46 = vadd.f32 %v784_v16, %v743_v15  ;;  %v953_v15 = vld [vmem:[#allocation2 + $0x2e0] sm:$0xff]  ;;  %v975_v16 = vld [vmem:[#allocation2 + $0x390] sm:$0xff] }
 0x270   : > { %1073 = vmatpush.msrb.mxu0 %v953_v15  ;;  %v899_v15 = vld [vmem:[#allocation2 + $0x130] sm:$0xff] }
 0x271   : > { %v820_v56 = vadd.f32 %v803_v54, %v785_v46  ;;  %v962_v46 = vld [vmem:[#allocation2 + $0x328] sm:$0xff] }
 0x272   : > { %1074 = vmatpush.msrb.mxu0 %v945_v19  ;;  %v946_v54 = vld [vmem:[#allocation2 + $0x2a8] sm:$0xff]  ;;  %v883_v19 = vld [vmem:[#allocation2 + $0xb0] sm:$0xff] }
 0x276   : > { %v787_v18 = vpop.f32.mrf.mxu2 }
 0x277   : > { %v788_v41 = vadd.f32 %v787_v18, %v746_v17  ;;  %v986_v17 = vld [vmem:[#allocation2 + $0x3e8] sm:$0xff]  ;;  %v968_v18 = vld [vmem:[#allocation2 + $0x358] sm:$0xff] }
 0x278   : > { %1089 = vmatpush.msra.mxu2 %v986_v17  ;;  %1051 = vmatpush.msrb.mxu3 %v968_v18  ;;  %v891_v17 = vld [vmem:[#allocation2 + $0xf0] sm:$0xff]  ;;  %v882_v18 = vld [vmem:[#allocation2 + $0xa8] sm:$0xff] }
 0x279   : > { %v821_v52 = vadd.f32 %v808_v50, %v788_v41  ;;  %v937_v41 = vld [vmem:[#allocation2 + $0x260] sm:$0xff]  ;;  %v954_v50 = vld [vmem:[#allocation2 + $0x2e8] sm:$0xff] }
 0x27a   : > { %1052 = vmatpush.msrb.mxu3 %v960_v22  ;;  %1075 = vmatpush.msrb.mxu0 %v937_v41  ;;  %v866_v22 = vld [vmem:[#allocation2 + $0x28] sm:$0xff]  ;;  %v900_v41 = vld [vmem:[#allocation2 + $0x138] sm:$0xff] }
 0x27c   : > { %1053 = vmatpush.msrb.mxu3 %v952_v24  ;;  %1076 = vmatpush.msrb.mxu0 %v929_v45  ;;  %v833_v24 = vpop.permute.xlu2 %832  ;;  %v868_v45 = vld [vmem:[#allocation2 + $0x38] sm:$0xff] }
 0x27e   : > { %v790_v27 = vpop.f32.mrf.mxu2  ;;  %1054 = vmatpush.msrb.mxu3 %v944_v26  ;;  %1077 = vmatpush.msrb.mxu0 %v921_v49 }
 0x27f   : > { %v791_v37 = vadd.f32 %v790_v27, %v749_v21  ;;  %v978_v21 = vld [vmem:[#allocation2 + $0x3a8] sm:$0xff]  ;;  %v943_v27 = vld [vmem:[#allocation2 + $0x290] sm:$0xff] }
 0x280   : > { %1090 = vmatpush.msra.mxu2 %v978_v21  ;;  %1055 = vmatpush.msrb.mxu3 %v936_v40  ;;  %v875_v21 = vld [vmem:[#allocation2 + $0x70] sm:$0xff]  ;;  %v908_v40 = vld [vmem:[#allocation2 + $0x178] sm:$0xff] }
 0x281   : > { %v822_v47 = vadd.f32 %v813_v44, %v791_v37  ;;  %v863_v37 = vld [vmem:[#allocation2 + $0x10] sm:$0xff]  ;;  %v928_v44 = vld [vmem:[#allocation2 + $0x218] sm:$0xff]  ;;  %1078 = vmatpush.msrb.mxu0 %v913_v53 }
 0x282   : > { %1056 = vmatpush.msrb.mxu3 %v928_v44  ;;  %v876_v44 = vld [vmem:[#allocation2 + $0x78] sm:$0xff] }
 0x283   : > { %1079 = vmatpush.msrb.mxu0 %v905_v57 }
 0x285   : > { %1080 = vmatpush.msrb.mxu0 %v897_v61 }
 0x286   : > { %v793_v39 = vpop.f32.mrf.mxu2 }
 0x287   : > { %v794_v42 = vadd.f32 %v793_v39, %v752_v35  ;;  %v879_v35 = vld [vmem:[#allocation2 + $0x90] sm:$0xff]  ;;  %1081 = vmatpush.msrb.mxu0 %v889_v1 }
 0x288   : > { %v979_v39 = vld [vmem:[#allocation2 + $0x3b0] sm:$0xff] }
 0x289   : > { %v823_v48 = vadd.f32 %v818_v32, %v794_v42  ;;  %v903_v32 = vld [vmem:[#allocation2 + $0x150] sm:$0xff]  ;;  %v970_v42 = vld [vmem:[#allocation2 + $0x368] sm:$0xff]  ;;  %1082 = vmatpush.msrb.mxu0 %v881_v5 }
 0x28a   : > { %1091 = vmatpush.msra.mxu2 %v970_v42  ;;  %v892_v42 = vld [vmem:[#allocation2 + $0xf8] sm:$0xff] }
 0x28b   : > { %1488 = vtanh.f32 %v823_v48  ;;  %v920_v48 = vld [vmem:[#allocation2 + $0x1d8] sm:$0xff]  ;;  %1083 = vmatpush.msrb.mxu0 %v873_v9 }
 0x28c   : > { %1490 = vtanh.f32 %v822_v47  ;;  %v963_v47 = vld [vmem:[#allocation2 + $0x330] sm:$0xff]  ;;  %1092 = vmatpush.msra.mxu2 %v962_v46  ;;  %1057 = vmatpush.msrb.mxu3 %v920_v48 }
 0x28d   : > { %1492 = vtanh.f32 %v821_v52  ;;  %v912_v52 = vld [vmem:[#allocation2 + $0x198] sm:$0xff]  ;;  %1084 = vmatpush.msrb.mxu0 %v865_v13 }
 0x28e   : > { %1494 = vtanh.f32 %v820_v56  ;;  %1093 = vmatpush.msra.mxu2 %v954_v50  ;;  %1058 = vmatpush.msrb.mxu3 %v912_v52  ;;  %v904_v56 = vld [vmem:[#allocation2 + $0x158] sm:$0xff] }
 0x290   : > { %1094 = vmatpush.msra.mxu2 %v946_v54  ;;  %1059 = vmatpush.msrb.mxu3 %v904_v56 }
 0x291   : > { %v1489_v62 = vpop.eup %1488 }
 0x292   : > { %850 = vmatpush.msrb.mxu1 %v1489_v62  ;;  %v1491_v2 = vpop.eup %1490  ;;  %1095 = vmatpush.msra.mxu2 %v938_v58  ;;  %v930_v62 = vld [vmem:[#allocation2 + $0x228] sm:$0xff] }
 0x293   : > { %v1493_v6 = vpop.eup %1492  ;;  %1060 = vmatpush.msrb.mxu3 %v896_v60 }
 0x294   : > { %851 = vmatpush.msrb.mxu1 %v1491_v2  ;;  %v1495_v11 = vpop.eup %1494  ;;  %1096 = vmatpush.msra.mxu2 %v930_v62  ;;  %v922_v2 = vld [vmem:[#allocation2 + $0x1e8] sm:$0xff] }
 0x295   : > { %1061 = vmatpush.msrb.mxu3 %v888_v0 }
 0x296   : > { %852 = vmatpush.msrb.mxu1 %v1493_v6  ;;  %1097 = vmatpush.msra.mxu2 %v922_v2  ;;  %v914_v6 = vld [vmem:[#allocation2 + $0x1a8] sm:$0xff] }
 0x297   : > { %1062 = vmatpush.msrb.mxu3 %v880_v4 }
 0x298   : > { %853 = vmatpush.msrb.mxu1 %v1495_v11  ;;  %v907_v11 = vld [vmem:[#allocation2 + $0x170] sm:$0xff]  ;;  %1098 = vmatpush.msra.mxu2 %v914_v6 }
 0x299   : > { %1395 = vmatmul.msk.f32.vlgmr.msrb.gmra.mxu1 %vm713_vm3, %v828_v8  ;;  %v872_v8 = vld [vmem:[#allocation2 + $0x58] sm:$0xff] }
 0x29a   : > { %1029 = vmatpush.msra.mxu1 %v983_v12  ;;  %v864_v12 = vld [vmem:[#allocation2 + $0x18] sm:$0xff]  ;;  %1063 = vmatpush.msrb.mxu3 %v872_v8 }
 0x29b   : > { %1099 = vmatpush.msra.mxu2 %v906_v10 }
 0x29c   : > { %1030 = vmatpush.msra.mxu1 %v975_v16  ;;  %1064 = vmatpush.msrb.mxu3 %v864_v12  ;;  %v890_v16 = vld [vmem:[#allocation2 + $0xe8] sm:$0xff] }
 0x29d   : > { %1100 = vmatpush.msra.mxu2 %v898_v14 }
 0x29e   : > { %1031 = vmatpush.msra.mxu1 %v967_v20  ;;  %v874_v20 = vld [vmem:[#allocation2 + $0x68] sm:$0xff] }
 0x29f   : > { %1101 = vmatpush.msra.mxu2 %v890_v16 }
 0x2a0   : > { %1032 = vmatpush.msra.mxu1 %v959_v23  ;;  %v867_v23 = vld [vmem:[#allocation2 + $0x30] sm:$0xff] }
 0x2a1   : > { %1102 = vmatpush.msra.mxu2 %v882_v18 }
 0x2a2   : > { %1033 = vmatpush.msra.mxu1 %v951_v25 }
 0x2a3   : > { %1103 = vmatpush.msra.mxu2 %v874_v20 }
 0x2a4   : > { %1034 = vmatpush.msra.mxu1 %v943_v27 }
 0x2a5   : > { %1104 = vmatpush.msra.mxu2 %v866_v22 }
 0x2a6   : > { %1035 = vmatpush.msra.mxu1 %v935_v28 }
 0x2a8   : > { %1036 = vmatpush.msra.mxu1 %v927_v29 }
 0x2aa   : > { %1037 = vmatpush.msra.mxu1 %v919_v30  ;;  %v988_v30 = vld [vmem:[#allocation2 + $0x3f8] sm:$0xff] }
 0x2ac   : > { %1038 = vmatpush.msra.mxu1 %v911_v31  ;;  %v980_v31 = vld [vmem:[#allocation2 + $0x3b8] sm:$0xff] }
 0x2ae   : > { %1039 = vmatpush.msra.mxu1 %v903_v32  ;;  %v972_v32 = vld [vmem:[#allocation2 + $0x378] sm:$0xff] }
 0x2b0   : > { %1040 = vmatpush.msra.mxu1 %v895_v33  ;;  %v964_v33 = vld [vmem:[#allocation2 + $0x338] sm:$0xff] }
 0x2b2   : > { %1041 = vmatpush.msra.mxu1 %v887_v34  ;;  %v956_v34 = vld [vmem:[#allocation2 + $0x2f8] sm:$0xff] }
 0x2b4   : > { %1042 = vmatpush.msra.mxu1 %v879_v35  ;;  %v948_v35 = vld [vmem:[#allocation2 + $0x2b8] sm:$0xff] }
 0x2b6   : > { %1043 = vmatpush.msra.mxu1 %v871_v36  ;;  %v940_v36 = vld [vmem:[#allocation2 + $0x278] sm:$0xff] }
 0x2b8   : > { %1044 = vmatpush.msra.mxu1 %v863_v37  ;;  %v932_v37 = vld [vmem:[#allocation2 + $0x238] sm:$0xff] }
 0x2ba   : > { %1109 = vmatpush.msrb.mxu1 %v987_v38  ;;  %v924_v38 = vld [vmem:[#allocation2 + $0x1f8] sm:$0xff] }
 0x2bc   : > { %1110 = vmatpush.msrb.mxu1 %v979_v39  ;;  %v916_v39 = vld [vmem:[#allocation2 + $0x1b8] sm:$0xff] }
 0x2be   : > { %1111 = vmatpush.msrb.mxu1 %v971_v43  ;;  %v884_v43 = vld [vmem:[#allocation2 + $0xb8] sm:$0xff] }
 0x2c0   : > { %1112 = vmatpush.msrb.mxu1 %v963_v47 }
 0x2c2   : > { %1113 = vmatpush.msrb.mxu1 %v955_v51 }
 0x2c4   : > { %1114 = vmatpush.msrb.mxu1 %v947_v55 }
 0x2c6   : > { %1115 = vmatpush.msrb.mxu1 %v939_v59 }
 0x2c8   : > { %1116 = vmatpush.msrb.mxu1 %v931_v63 }
 0x2ca   : > { %1117 = vmatpush.msrb.mxu1 %v923_v3 }
 0x2cc   : > { %1118 = vmatpush.msrb.mxu1 %v915_v7 }
 0x2ce   : > { %1119 = vmatpush.msrb.mxu1 %v907_v11 }
 0x2d0   : > { %1120 = vmatpush.msrb.mxu1 %v899_v15 }
 0x2d2   : > { %1121 = vmatpush.msrb.mxu1 %v891_v17 }
 0x2d4   : > { %1122 = vmatpush.msrb.mxu1 %v883_v19 }
 0x2d6   : > { %1123 = vmatpush.msrb.mxu1 %v875_v21 }
 0x2d8   : > { %1124 = vmatpush.msrb.mxu1 %v867_v23 }
 0x316   : > { %v855_v25 = vpop.f32.mrf.mxu1 }
 0x317   : > { %v856_v26 = vadd.f32 %v855_v25, %v833_v24 }
 0x319   : > { %1496 = vtanh.f32 %v856_v26 }
 0x31f   : > { %v1497_v27 = vpop.eup %1496 }
 0x320   : > { %v859_v28 = vmul.f32 1.442695, %v1497_v27 }
 0x322   : > { %1498 = vpow2.f32 %v859_v28 }
 0x328   : > { %v1917_v29 = vpop.eup %1498 }
 0x329   : > { %1005 = vmatmul.f32.vlgmr.msra.gmra.mxu3 %v1917_v29  ;;  %1025 = vmatmul.f32.vlgmr.msrb.gmra.mxu2 %v1917_v29 }
 0x32a   : > { %1045 = vmatmul.f32.vlgmr.msra.gmra.mxu1 %v1917_v29  ;;  %1085 = vmatmul.f32.vlgmr.msrb.gmra.mxu0 %v1917_v29 }
 0x32b   : > { %1129 = vmatpush.msra.mxu3 %v988_v30 }
 0x32d   : > { %1130 = vmatpush.msra.mxu3 %v980_v31 }
 0x32f   : > { %1131 = vmatpush.msra.mxu3 %v972_v32 }
 0x331   : > { %1132 = vmatpush.msra.mxu3 %v964_v33  ;;  %1105 = vmatmul.f32.vlgmr.msra.gmra.mxu2 %v1917_v29 }
 0x332   : > { %1065 = vmatmul.f32.vlgmr.msrb.gmra.mxu3 %v1917_v29  ;;  %1125 = vmatmul.f32.vlgmr.msrb.gmra.mxu1 %v1917_v29 }
 0x333   : > { %1133 = vmatpush.msra.mxu3 %v956_v34 }
 0x335   : > { %1134 = vmatpush.msra.mxu3 %v948_v35 }
 0x337   : > { %1135 = vmatpush.msra.mxu3 %v940_v36 }
 0x339   : > { %1136 = vmatpush.msra.mxu3 %v932_v37 }
 0x33b   : > { %1137 = vmatpush.msra.mxu3 %v924_v38 }
 0x33d   : > { %1138 = vmatpush.msra.mxu3 %v916_v39 }
 0x33f   : > { %1139 = vmatpush.msra.mxu3 %v908_v40 }
 0x341   : > { %1140 = vmatpush.msra.mxu3 %v900_v41 }
 0x343   : > { %1141 = vmatpush.msra.mxu3 %v892_v42 }
 0x345   : > { %1142 = vmatpush.msra.mxu3 %v884_v43 }
 0x347   : > { %1143 = vmatpush.msra.mxu3 %v876_v44 }
 0x349   : > { %1144 = vmatpush.msra.mxu3 %v868_v45 }
 0x34a   : > { %1145 = vmatmul.f32.vlgmr.msra.gmra.mxu3 %v1917_v29 }
 0x3a7   : > { %v1046_v49 = vpop.f32.mrf.mxu1  ;;  %v1086_v53 = vpop.f32.mrf.mxu0 }
 0x3ac   : > { %v1006_v46 = vpop.f32.mrf.mxu3  ;;  %v1026_v47 = vpop.f32.mrf.mxu2 }
 0x3ad   : > { %v1149_v48 = vadd.f32 %v1026_v47, %v1006_v46  ;;  %v1150_v57 = vmax.f32 %v1006_v46, %v1026_v47  ;;  %v1151_v58 = vmin.f32 %v1006_v46, %v1026_v47 }
 0x3af   : > { %v1152_v51 = vadd.f32 %v1149_v48, %v1046_v49  ;;  %v1126_v59 = vpop.f32.mrf.mxu1  ;;  %v1153_v63 = vmax.f32 %v1150_v57, %v1046_v49  ;;  %v1154_v0 = vmin.f32 %v1151_v58, %v1046_v49 }
 0x3b4   : > { %v1106_v55 = vpop.f32.mrf.mxu2 }
 0x3b5   : > { %v1066_v50 = vpop.f32.mrf.mxu3 }
 0x3b6   : > { %v1155_v52 = vadd.f32 %v1152_v51, %v1066_v50  ;;  %v1156_v1 = vmax.f32 %v1153_v63, %v1066_v50  ;;  %v1157_v2 = vmin.f32 %v1154_v0, %v1066_v50 }
 0x3b8   : > { %v1158_v54 = vadd.f32 %v1155_v52, %v1086_v53  ;;  %v1159_v3 = vmax.f32 %v1156_v1, %v1086_v53  ;;  %v1160_v4 = vmin.f32 %v1157_v2, %v1086_v53 }
 0x3ba   : > { %v1161_v56 = vadd.f32 %v1158_v54, %v1106_v55  ;;  %v1162_v7 = vmax.f32 %v1159_v3, %v1106_v55  ;;  %v1163_v8 = vmin.f32 %v1160_v4, %v1106_v55 }
 0x3bc   : > { %v1164_v60 = vadd.f32 %v1161_v56, %v1126_v59  ;;  %v1165_v13 = vmax.f32 %v1162_v7, %v1126_v59  ;;  %v1166_v14 = vmin.f32 %v1163_v8, %v1126_v59 }
 0x3cd   : > { %v1146_v61 = vpop.f32.mrf.mxu3 }
 0x3ce   : > { %v1167_v62 = vadd.f32 %v1164_v60, %v1146_v61  ;;  %v1168_v17 = vmax.f32 %v1165_v13, %v1146_v61  ;;  %v1169_v18 = vmin.f32 %v1166_v14, %v1146_v61 }
 0x3d0   : > { %1500 = vrcp.f32 %v1167_v62  ;;  %v1181_v10 = vand.u32 2147483648, %v1167_v62  ;;  %v1179_v12 = vand.u32 2147483647, %v1167_v62  ;;  %vm1175_vm5 = vweird.f32 %v1167_v62 }
 0x3d2   : > { %v1182_v16 = vor.u32 1.1754944e-38, %v1181_v10  ;;  %vm1180_vm7 = vcmp.eq.f32.partialorder %v1179_v12, 8.507059e+37 }
 0x3d6   : > { %v1501_v5 = vpop.eup %1500 }
 0x3d7   : > { %v1171_v6 = vmul.f32 %v1501_v5, %v1167_v62  ;;  %vm1176_vm4 = vweird.f32 %v1501_v5 }
 0x3d8   : > { %vm1177_vm6 = vmor %vm1175_vm5, %vm1176_vm4 }
 0x3d9   : > { %v1172_v9 = vsub.f32 1.0, %v1171_v6 }
 0x3db   : > { %v1173_v11 = vmul.f32 %v1501_v5, %v1172_v9 }
 0x3dd   : > { %v1174_v15 = vadd.f32 %v1501_v5, %v1173_v11 }
 0x3df   : > { %v1178_v19 = vsel %vm1177_vm6, %v1501_v5, %v1174_v15 }
 0x3e0   : > { %v1183_v20 = vsel %vm1180_vm7, %v1182_v16, %v1178_v19 }
 0x3e1   : > { %v1184_v21 = vmul.f32 %v1917_v29, %v1183_v20  ;;  %v1185_v22 = vmul.f32 %v1183_v20, %v1169_v18  ;;  %v1186_v23 = vmul.f32 %v1183_v20, %v1168_v17 }
 0x3e3   : > { %v1187_v24 = vsub.f32 %v1186_v23, %v1185_v22  ;;  %1206 = vst [vmem:[%s331_s26] sm:$0x1] %v1184_v21 }
 0x3e4   : > { %1561 = shalt.err (!%p1558_p8)
}
 0x3e5   : > { %1409 = dma.vmem_to_hbm [thread:$0]  (%p1721_p5), %s1224_s10, 16, %s1226_s12, %s1209_s17   ;;  %v1188_v25 = vadd.f32 1e-06, %v1187_v24  ;;  %v1204_v37 = vsub.f32 %v1184_v21, %v1185_v22 }
 0x3e6   : > { %s1234_s18 = scalar_lea.hbm %s1991_s8, %s1704_s9  ;;  %s337_s10 = scalar_lea.vmem [#allocation6], %s1928_s22 }
 0x3e7   : > { %1502 = vrcp.f32 %v1188_v25  ;;  %v1200_v29 = vand.u32 2147483648, %v1188_v25  ;;  %v1198_v31 = vand.u32 2147483647, %v1188_v25  ;;  %vm1194_vm9 = vweird.f32 %v1188_v25  ;;  %s1236_s12 = sshll.u32 %s337_s10, 4  ;;  %s1238_s17 = sshll.u32 %s1234_s18, 4  ;;  %s1237_s12 = int_to_ptr.vmem [resolvable:$true] %s1236_s12  ;;  %s1239_s17 = int_to_ptr.hbm [resolvable:$true] %s1238_s17 }
 0x3e8   : > { %s1213_s13 = scalar_lea.sflag [#allocation7], %s1928_s22  ;;  %s1576_s19 = sshra.s32 %s1239_s17, 4  ;;  %s1577_s19 = int_to_ptr.hbm [resolvable:$true] %s1576_s19 }
 0x3e9   : > { %v1201_v33 = vor.u32 1.1754944e-38, %v1200_v29  ;;  %vm1199_vm11 = vcmp.eq.f32.partialorder %v1198_v31, 8.507059e+37  ;;  %s1578_s20 = scalar_lea.hbm %s1577_s19, 1  ;;  %s1582_s23 = scalar_lea.hbm %s1991_s8, 2 }
 0x3ea   : > { %p1579_p9 = scmp.ne.s32.totalorder %s1577_s19, %s1578_s20  ;;  %p1583_p12 = scmp.lt.s32.totalorder %s1577_s19, %s1991_s8 }
 0x3eb   : > { %p1584_p13 = scmp.lt.s32.totalorder %s1582_s23, %s1578_s20 }
 0x3ec   : > { %p1580_p10 = pnand %p1579_p9, %p1721_p5 }
 0x3ed   : > { %v1503_v26 = vpop.eup %1502  ;;  %p1585_p0 = por %p1584_p13, %p1583_p12 }
 0x3ee   : > { %v1190_v27 = vmul.f32 %v1503_v26, %v1188_v25  ;;  %vm1195_vm8 = vweird.f32 %v1503_v26  ;;  %p1581_p11 = pneg %p1580_p10 }
 0x3ef   : > { %vm1196_vm10 = vmor %vm1194_vm9, %vm1195_vm8 }
 0x3f0   : > { %v1191_v28 = vsub.f32 1.0, %v1190_v27  ;;  %p1586_p1 = pnand %p1585_p0, %p1581_p11 }
 0x3f2   : > { %v1192_v30 = vmul.f32 %v1503_v26, %v1191_v28 }
 0x3f4   : > { %v1193_v32 = vadd.f32 %v1503_v26, %v1192_v30 }
 0x3f6   : > { %v1197_v34 = vsel %vm1196_vm10, %v1503_v26, %v1193_v32 }
 0x3f7   : > { %v1202_v35 = vsel %vm1199_vm11, %v1201_v33, %v1197_v34 }
 0x3f8   : > { %v1203_v36 = vmul.f32 1.000001, %v1202_v35 }
 0x3fa   : > { %v1205_v38 = vmul.f32 %v1204_v37, %v1203_v36 }
 0x3fc   : > { %1207 = vst [vmem:[%s337_s10] sm:$0x1] %v1205_v38 }
 0x3fd   : > { %1589 = shalt.err (!%p1586_p1)
}
 0x3fe   : > { %1410 = dma.vmem_to_hbm [thread:$0]  (%p1721_p5), %s1237_s12, 16, %s1239_s17, %s1213_s13  }
 0x3ff PF: > { %p1426_p2 = scmp.ge.s32.totalorder %s1632_s30, 2  ;;  %s1250_s22 = sand.u32 1, %s1620_s27  }
 0x400   : > { %s1251_s26 = scalar_lea.sflag [#allocation4], %s1250_s22 }
 0x401   : > { %p1418_p3 = pnand %p1426_p2, %p1725_p6 }
 0x403   : > { %p1419_p4 = pneg %p1418_p3 }
 0x405   : > { %1611 = dma.done.wait (%p1419_p4), %s1251_s26, 16  }
 0x406   : > { %1613 = vsyncadd (%p1419_p4), %s1251_s26, 4294967280  ;;  %s1260_s18 = scalar_lea.sflag [#allocation7], %s1250_s22 }
 0x407   : > { %1615 = dma.done.wait (%p1419_p4), %s1260_s18, 16  }
 0x408   : > { %1617 = vsyncadd (%p1419_p4), %s1260_s18, 4294967280  ;;  %p23_p5 = scmp.ge.s32.totalorder %s1708_s11, 4   ;;  %s1994_s27 = smov %s1624_s28 }
 0x409   : > { %s1995_s28 = smov %s1628_s29  ;;  %s1996_s29 = smov %s1719_s14 }
 0x40a   : > { %s1997_s30 = smov %s1708_s11  ;;  %25 = sbr.rel (!%p23_p5) target bundleno = 6 (0x6), region = 108 }
 0x40f   :  { %1265 = vsyncpa [#allocation3], 1 }
 0x410   :  { %1267 = vsyncpa [#allocation3 + $0x1], 1 }
 0x411   :  { %1268 = vsyncpa [#allocation4], 1 }
 0x412   :  { %1270 = vsyncpa [#allocation4 + $0x1], 1 }
 0x413   :  { %1271 = vsyncpa [#allocation7], 1 }
 0x414   :  { %1273 = vsyncpa [#allocation7 + $0x1], 1 }

</bundles_post_ra>
